<compile_context>
chip_gen: v6e
topology: v6e:2x2x1
jax: 0.10.0
libtpu: 0.0.40
codegen_flags: <defaults>
</compile_context>

<pallas_src>
import jax
import jax.numpy as jnp
from jax.experimental import pallas as pl
from jax.experimental.pallas import tpu as pltpu

# lanes of each per-tile partial row:
# [si_sq, pos_sq, norm_sum, mask_sum, inter_num, inter_den, 0, 0]
_NUM_PARTIALS = 8


def _round_up(x, m):
    return ((x + m - 1) // m) * m


def _tiling(n, max_tile):
    """Row tile (multiple of 8 sublanes) and padded row count (multiple of the tile)."""
    tm = min(max_tile, _round_up(n, 8))
    n_pad = _round_up(n, tm)
    return tm, n_pad


def _pad_rows(x, n_pad):
    n = x.shape[0]
    if n == n_pad:
        return x
    return jnp.pad(x, ((0, n_pad - n),) + ((0, 0),) * (x.ndim - 1))


def _pack_partials(vals):
    """Pack scalars into a (1, 1, 8) f32 vector with iota-selects (pure VPU, robust lowering)."""
    lane = jax.lax.broadcasted_iota(jnp.int32, (1, 1, _NUM_PARTIALS), 2)
    out = jnp.zeros((1, 1, _NUM_PARTIALS), jnp.float32)
    for k, v in enumerate(vals):
        out = out + jnp.where(lane == k, v, 0.0)
    return out


# --------------------------------------------------------------------------------------
# Fused kernel: SI head + decode + masked position losses + inter-distance loss.
# Grid tiles the (B*T) row axis; every grid step writes its own partial-sum row, so the
# axis is "parallel" (no resident scalar accumulator).
# --------------------------------------------------------------------------------------
def _fused_kernel(x1_ref, noise_ref, t_ref, valid_ref, pos_ref, mask_ref,
                  siw_ref, sib_ref, decw_ref, decb_ref,
                  pred_ref, part_ref):
    x1 = x1_ref[...]                                  # (tm, Dlat) f32 target latents
    noise = noise_ref[...]
    t = t_ref[...]                                    # (tm, 1)
    valid = valid_ref[...]                            # (tm, 1) row-validity (padding gate)

    # Stochastic interpolant (ModelType.DATA): x_t = t*x1 + (1-t)*noise, model predicts x1.
    xt = t * x1 + (1.0 - t) * noise

    # SI head (MXU, bf16 operands, f32 accumulation).
    pred = jnp.dot(xt.astype(jnp.bfloat16), siw_ref[...],
                   preferred_element_type=jnp.float32) + sib_ref[...]
    pred_ref[...] = pred.astype(pred_ref.dtype)

    si_err = pred - x1
    si_sq = jnp.sum(valid * si_err * si_err)          # SI squared-error partial sum

    # Linear position decoder, coordinate-major: (tm, Dlat) @ (Dlat, D*L) -> (tm, D*L).
    pp = jnp.dot(pred.astype(jnp.bfloat16), decw_ref[...],
                 preferred_element_type=jnp.float32) + decb_ref[...]

    L = mask_ref.shape[1]
    px, py, pz = pp[:, 0:L], pp[:, L:2 * L], pp[:, 2 * L:3 * L]        # (tm, L) each
    tp = pos_ref[...]                                                   # (tm, D*L) coord-major
    tx, ty, tz = tp[:, 0:L], tp[:, L:2 * L], tp[:, 2 * L:3 * L]
    m = mask_ref[...]                                                   # (tm, L) f32 (0 on pad)

    # MaskedMSELoss + MaskedNormLoss (per-atom, no last-dim-3 reductions).
    ddx, ddy, ddz = px - tx, py - ty, pz - tz
    atom_sq = ddx * ddx + ddy * ddy + ddz * ddz                         # (tm, L)
    pos_sq = jnp.sum(m * atom_sq)
    norm_sum = jnp.sum(m * jnp.sqrt(atom_sq))
    mask_sum = jnp.sum(m)

    # InterDistanceLoss: pairwise distances via direct VPU coordinate differences.
    def pdist(cx, cy, cz):
        dx = cx[:, :, None] - cx[:, None, :]
        dy = cy[:, :, None] - cy[:, None, :]
        dz = cz[:, :, None] - cz[:, None, :]
        return jnp.sqrt(dx * dx + dy * dy + dz * dz)                    # (tm, L, L)

    dp = pdist(px, py, pz)
    dt = pdist(tx, ty, tz)
    eye = (jax.lax.broadcasted_iota(jnp.int32, (L, L), 0)
           == jax.lax.broadcasted_iota(jnp.int32, (L, L), 1))
    off_diag = jnp.where(eye, 0.0, 1.0)[None, :, :]
    pair_m = m[:, :, None] * m[:, None, :] * off_diag                   # (tm, L, L)
    derr = dp - dt
    inter_num = jnp.sum(pair_m * derr * derr)
    inter_den = jnp.sum(pair_m)

    part_ref[...] = _pack_partials([si_sq, pos_sq, norm_sum, mask_sum, inter_num, inter_den])


# --------------------------------------------------------------------------------------
# SI-only kernel (calc_additional_losses=False).
# --------------------------------------------------------------------------------------
def _si_only_kernel(x1_ref, noise_ref, t_ref, valid_ref, siw_ref, sib_ref,
                    pred_ref, part_ref):
    x1 = x1_ref[...]
    noise = noise_ref[...]
    t = t_ref[...]
    valid = valid_ref[...]
    xt = t * x1 + (1.0 - t) * noise
    pred = jnp.dot(xt.astype(jnp.bfloat16), siw_ref[...],
                   preferred_element_type=jnp.float32) + sib_ref[...]
    pred_ref[...] = pred.astype(pred_ref.dtype)
    err = pred - x1
    part_ref[...] = _pack_partials([jnp.sum(valid * err * err)])


# --------------------------------------------------------------------------------------
# Wrappers
# --------------------------------------------------------------------------------------
def fused_losses(x1, noise, t, valid, pos_cm, mask, si_w, si_b, dec_w_cm, dec_b_cm,
                 *, tile=512):
    n, dlat = x1.shape
    L = mask.shape[1]
    dl = pos_cm.shape[1]                      # D * L
    tm, n_pad = _tiling(n, tile)
    n_tiles = n_pad // tm

    x1, noise, t, valid, pos_cm, mask = (_pad_rows(a, n_pad)
                                         for a in (x1, noise, t, valid, pos_cm, mask))

    pred, partials = pl.pallas_call(
        _fused_kernel,
        out_shape=(
            jax.ShapeDtypeStruct((n_pad, dlat), jnp.float32),
            jax.ShapeDtypeStruct((n_tiles, 1, _NUM_PARTIALS), jnp.float32),
        ),
        grid_spec=pltpu.PrefetchScalarGridSpec(
            num_scalar_prefetch=0,
            grid=(n_tiles,),
            in_specs=[
                pl.BlockSpec((tm, dlat), lambda i: (i, 0)),      # x1 rows
                pl.BlockSpec((tm, dlat), lambda i: (i, 0)),      # noise rows
                pl.BlockSpec((tm, 1), lambda i: (i, 0)),         # t rows
                pl.BlockSpec((tm, 1), lambda i: (i, 0)),         # row-validity
                pl.BlockSpec((tm, dl), lambda i: (i, 0)),        # target pos (coord-major)
                pl.BlockSpec((tm, L), lambda i: (i, 0)),         # attention mask
                pl.BlockSpec((dlat, dlat), lambda i: (0, 0)),    # SI weight   (resident)
                pl.BlockSpec((1, dlat), lambda i: (0, 0)),       # SI bias     (resident)
                pl.BlockSpec((dlat, dl), lambda i: (0, 0)),      # decode W    (resident)
                pl.BlockSpec((1, dl), lambda i: (0, 0)),         # decode b    (resident)
            ],
            out_specs=[
                pl.BlockSpec((tm, dlat), lambda i: (i, 0)),                # pred_latent rows
                pl.BlockSpec((1, 1, _NUM_PARTIALS), lambda i: (i, 0, 0)),  # per-tile partials
            ],
        ),
        compiler_params=pltpu.CompilerParams(dimension_semantics=("parallel",)),
    )(x1, noise, t, valid, pos_cm, mask, si_w, si_b, dec_w_cm, dec_b_cm)
    return pred[:n], partials.sum(axis=(0, 1))


def si_losses(x1, noise, t, valid, si_w, si_b, *, tile=512):
    n, dlat = x1.shape
    tm, n_pad = _tiling(n, tile)
    n_tiles = n_pad // tm

    x1, noise, t, valid = (_pad_rows(a, n_pad) for a in (x1, noise, t, valid))

    pred, partials = pl.pallas_call(
        _si_only_kernel,
        out_shape=(
            jax.ShapeDtypeStruct((n_pad, dlat), jnp.float32),
            jax.ShapeDtypeStruct((n_tiles, 1, _NUM_PARTIALS), jnp.float32),
        ),
        grid_spec=pltpu.PrefetchScalarGridSpec(
            num_scalar_prefetch=0,
            grid=(n_tiles,),
            in_specs=[
                pl.BlockSpec((tm, dlat), lambda i: (i, 0)),
                pl.BlockSpec((tm, dlat), lambda i: (i, 0)),
                pl.BlockSpec((tm, 1), lambda i: (i, 0)),
                pl.BlockSpec((tm, 1), lambda i: (i, 0)),
                pl.BlockSpec((dlat, dlat), lambda i: (0, 0)),
                pl.BlockSpec((1, dlat), lambda i: (0, 0)),
            ],
            out_specs=[
                pl.BlockSpec((tm, dlat), lambda i: (i, 0)),
                pl.BlockSpec((1, 1, _NUM_PARTIALS), lambda i: (i, 0, 0)),
            ],
        ),
        compiler_params=pltpu.CompilerParams(dimension_semantics=("parallel",)),
    )(x1, noise, t, valid, si_w, si_b)
    return pred[:n], partials.sum(axis=(0, 1))


# --------------------------------------------------------------------------------------
# Loss module (mirrors the PyTorch `Loss.forward` semantics).
# --------------------------------------------------------------------------------------
class PallasLoss:
    def __init__(self, weight_si_loss=1.0, weight_pos_loss=0.0,
                 weight_inter_dist_loss=0.0, weight_norm_loss=0.0,
                 calc_additional_losses=False, row_tile=512):
        self.weight_si_loss = weight_si_loss
        self.weight_pos_loss = weight_pos_loss
        self.weight_inter_dist_loss = weight_inter_dist_loss
        self.weight_norm_loss = weight_norm_loss
        self.calc_additional_losses = calc_additional_losses
        self.row_tile = row_tile

    def __call__(self, params, batch):
        B, T, Dlat = batch['x1'].shape
        n = B * T
        x1 = batch['x1'].reshape(n, Dlat).astype(jnp.float32)
        noise = batch['noise'].reshape(n, Dlat).astype(jnp.float32)
        t = batch['t'].reshape(n, 1).astype(jnp.float32)
        valid = jnp.ones((n, 1), jnp.float32)
        si_w = params['si_w'].astype(jnp.bfloat16)
        si_b = params['si_b'].astype(jnp.float32)

        if self.calc_additional_losses:
            L, D = batch['pos'].shape[2], batch['pos'].shape[3]
            # Coordinate-major layouts (x-block | y-block | z-block) so the kernel never
            # reduces over a last dim of 3 and needs no in-kernel reshape.
            pos_cm = jnp.transpose(batch['pos'].reshape(n, L, D), (0, 2, 1)).reshape(n, D * L)
            mask = batch['attention_mask'].reshape(n, L).astype(jnp.float32)
            dec_w_cm = params['dec_w'].reshape(Dlat, L, D).transpose(0, 2, 1) \
                                      .reshape(Dlat, D * L).astype(jnp.bfloat16)
            dec_b_cm = params['dec_b'].reshape(1, L, D).transpose(0, 2, 1) \
                                      .reshape(1, D * L).astype(jnp.float32)

            # TODO(synk): `entities` conditioning inside model.decode has no reference impl;
            # decode is synthesized as a linear head latent -> (L*D) positions.
            pred_flat, sums = fused_losses(x1, noise, t, valid, pos_cm, mask,
                                           si_w, si_b, dec_w_cm, dec_b_cm,
                                           tile=self.row_tile)

            si_loss = sums[0] / (n * Dlat)                  # out['loss'].mean()
            pos_loss = sums[1] / (sums[3] * D)              # MaskedMSELoss
            dist = sums[2] / sums[3]                        # MaskedNormLoss
            inter_dist_loss = sums[4] / sums[5]             # InterDistanceLoss

            total = (self.weight_si_loss * si_loss
                     + self.weight_pos_loss * pos_loss
                     + self.weight_inter_dist_loss * inter_dist_loss)
            # Note: like the reference forward, `dist` / weight_norm_loss is reported but
            # not added into the total loss.
            losses = {'si_loss': si_loss, 'loss': total, 'pos_loss': pos_loss,
                      'inter_dist_loss': inter_dist_loss, 'dist': dist}
            return losses, pred_flat                         # (B*T, Dlat) flat view, as in torch
        else:
            pred_flat, sums = si_losses(x1, noise, t, valid, si_w, si_b, tile=self.row_tile)
            si_loss = sums[0] / (n * Dlat)
            losses = {'si_loss': si_loss, 'loss': si_loss * self.weight_si_loss}
            return losses, pred_flat.reshape(B, T, Dlat)


if __name__ == "__main__":
    B, T, Dlat, L, D = 2, 8, 32, 8, 3

    key = jax.random.PRNGKey(0)
    k_x1, k_noise, k_t, k_pos, k_mask, k_sw, k_dw, k_ent = jax.random.split(key, 8)

    batch = {
        'x1': jax.random.normal(k_x1, (B, T, Dlat), jnp.float32),
        'noise': jax.random.normal(k_noise, (B, T, Dlat), jnp.float32),
        't': jax.random.uniform(k_t, (B, T, 1), jnp.float32),
        'pos': jax.random.normal(k_pos, (B, T, L, D), jnp.float32),
        'attention_mask': (jax.random.uniform(k_mask, (B, T, L)) > 0.2).astype(jnp.float32),
        'entities': jax.random.randint(k_ent, (B, T, L), 0, 5),
    }

    params = {
        'si_w': 0.1 * jax.random.normal(k_sw, (Dlat, Dlat), jnp.float32),
        'si_b': jnp.zeros((1, Dlat), jnp.float32),
        'dec_w': 0.1 * jax.random.normal(k_dw, (Dlat, L * D), jnp.float32),
        'dec_b': jnp.zeros((1, L * D), jnp.float32),
    }

    # Full path (fused kernel).
    loss_mod = PallasLoss(weight_si_loss=1.0, weight_pos_loss=0.1,
                          weight_inter_dist_loss=0.1, weight_norm_loss=0.0,
                          calc_additional_losses=True)
    losses, pred_latent = loss_mod(params, batch)
    jax.block_until_ready(losses['loss'])
    jax.block_until_ready(pred_latent)

    # SI-only path.
    loss_mod_si = PallasLoss(weight_si_loss=1.0, calc_additional_losses=False)
    losses_si, pred_latent_si = loss_mod_si(params, batch)
    jax.block_until_ready(losses_si['loss'])
    jax.block_until_ready(pred_latent_si)

    print("KERNEL_OK")
</pallas_src>

<mosaic_0001>
module attributes {stable_mosaic.version = 11 : i64} {
  func.func @_fused_kernel(%arg0: i32, %arg1: memref<16x32xf32, #tpu.memory_space<vmem>>, %arg2: memref<16x32xf32, #tpu.memory_space<vmem>>, %arg3: memref<16x1xf32, #tpu.memory_space<vmem>>, %arg4: memref<16x1xf32, #tpu.memory_space<vmem>>, %arg5: memref<16x24xf32, #tpu.memory_space<vmem>>, %arg6: memref<16x8xf32, #tpu.memory_space<vmem>>, %arg7: memref<32x32xbf16, #tpu.memory_space<vmem>>, %arg8: memref<1x32xf32, #tpu.memory_space<vmem>>, %arg9: memref<32x24xbf16, #tpu.memory_space<vmem>>, %arg10: memref<1x24xf32, #tpu.memory_space<vmem>>, %arg11: memref<16x32xf32, #tpu.memory_space<vmem>>, %arg12: memref<1x1x8xf32, #tpu.memory_space<vmem>>) attributes {dimension_semantics = [#tpu.dimension_semantics<parallel>], iteration_bounds = array<i64: 1>, scalar_prefetch = 0 : i64, scratch_operands = 0 : i64, tpu.core_type = #tpu.core_type<tc>, window_params = [{transform_indices = @transform_0, window_bounds = array<i64: 16, 32>}, {transform_indices = @transform_1, window_bounds = array<i64: 16, 32>}, {transform_indices = @transform_2, window_bounds = array<i64: 16, 1>}, {transform_indices = @transform_3, window_bounds = array<i64: 16, 1>}, {transform_indices = @transform_4, window_bounds = array<i64: 16, 24>}, {transform_indices = @transform_5, window_bounds = array<i64: 16, 8>}, {pipeline_mode = #tpu.pipeline_mode<synchronous>, transform_indices = @transform_6, window_bounds = array<i64: 32, 32>}, {pipeline_mode = #tpu.pipeline_mode<synchronous>, transform_indices = @transform_7, window_bounds = array<i64: 1, 32>}, {pipeline_mode = #tpu.pipeline_mode<synchronous>, transform_indices = @transform_8, window_bounds = array<i64: 32, 24>}, {pipeline_mode = #tpu.pipeline_mode<synchronous>, transform_indices = @transform_9, window_bounds = array<i64: 1, 24>}, {transform_indices = @transform_10, window_bounds = array<i64: 16, 32>}, {transform_indices = @transform_11, window_bounds = array<i64: 1, 1, 8>}]} {
    %c0 = arith.constant 0 : index
    %c0_0 = arith.constant 0 : index
    %0 = vector.load %arg1[%c0, %c0_0] : memref<16x32xf32, #tpu.memory_space<vmem>>, vector<16x32xf32>
    %c0_1 = arith.constant 0 : index
    %c0_2 = arith.constant 0 : index
    %1 = vector.load %arg2[%c0_1, %c0_2] : memref<16x32xf32, #tpu.memory_space<vmem>>, vector<16x32xf32>
    %c0_3 = arith.constant 0 : index
    %c0_4 = arith.constant 0 : index
    %2 = vector.load %arg3[%c0_3, %c0_4] : memref<16x1xf32, #tpu.memory_space<vmem>>, vector<16x1xf32>
    %c0_5 = arith.constant 0 : index
    %c0_6 = arith.constant 0 : index
    %3 = vector.load %arg4[%c0_5, %c0_6] : memref<16x1xf32, #tpu.memory_space<vmem>>, vector<16x1xf32>
    %4 = vector.broadcast %2 : vector<16x1xf32> to vector<16x32xf32>
    %5 = arith.mulf %4, %0 : vector<16x32xf32>
    %cst = arith.constant 1.000000e+00 : f32
    %6 = vector.broadcast %cst : f32 to vector<16x1xf32>
    %7 = arith.subf %6, %2 : vector<16x1xf32>
    %8 = vector.broadcast %7 : vector<16x1xf32> to vector<16x32xf32>
    %9 = arith.mulf %8, %1 : vector<16x32xf32>
    %10 = arith.addf %5, %9 : vector<16x32xf32>
    %11 = arith.truncf %10 : vector<16x32xf32> to vector<16x32xbf16>
    %c0_7 = arith.constant 0 : index
    %c0_8 = arith.constant 0 : index
    %12 = vector.load %arg7[%c0_7, %c0_8] : memref<32x32xbf16, #tpu.memory_space<vmem>>, vector<32x32xbf16>
    %cst_9 = arith.constant dense<0.000000e+00> : vector<16x32xf32>
    %13 = tpu.matmul %11, %12, %cst_9 {dimension_numbers = #tpu.dot_dimension_numbers<[1], [0], [0], [1], [0, 0, 1, 1], [], []>} : vector<16x32xbf16>, vector<32x32xbf16>, vector<16x32xf32> -> vector<16x32xf32>
    %c0_10 = arith.constant 0 : index
    %c0_11 = arith.constant 0 : index
    %14 = vector.load %arg8[%c0_10, %c0_11] : memref<1x32xf32, #tpu.memory_space<vmem>>, vector<1x32xf32>
    %15 = vector.broadcast %14 : vector<1x32xf32> to vector<16x32xf32>
    %16 = arith.addf %13, %15 : vector<16x32xf32>
    %c0_12 = arith.constant 0 : index
    %c0_13 = arith.constant 0 : index
    %17 = vector.load %arg11[%c0_12, %c0_13] : memref<16x32xf32, #tpu.memory_space<vmem>>, vector<16x32xf32>
    tpu.vector_store %arg11[%c0_12, %c0_13], %16 {strides = array<i32>} : memref<16x32xf32, #tpu.memory_space<vmem>>, vector<16x32xf32>,
    %18 = arith.subf %16, %0 : vector<16x32xf32>
    %19 = vector.broadcast %3 : vector<16x1xf32> to vector<16x32xf32>
    %20 = arith.mulf %19, %18 : vector<16x32xf32>
    %21 = arith.mulf %20, %18 : vector<16x32xf32>
    %22 = vector.shape_cast %21 : vector<16x32xf32> to vector<1x16x32xf32>
    %cst_14 = arith.constant dense<0.000000e+00> : vector<1xf32>
    %23 = vector.multi_reduction <add>, %22, %cst_14 [1, 2] : vector<1x16x32xf32> to vector<1xf32>
    %24 = vector.shape_cast %23 : vector<1xf32> to vector<1x1x1xf32>
    %25 = vector.extract %24[0, 0, 0] : f32 from vector<1x1x1xf32>
    %26 = arith.truncf %16 : vector<16x32xf32> to vector<16x32xbf16>
    %c0_15 = arith.constant 0 : index
    %c0_16 = arith.constant 0 : index
    %27 = vector.load %arg9[%c0_15, %c0_16] : memref<32x24xbf16, #tpu.memory_space<vmem>>, vector<32x24xbf16>
    %cst_17 = arith.constant dense<0.000000e+00> : vector<16x24xf32>
    %28 = tpu.matmul %26, %27, %cst_17 {dimension_numbers = #tpu.dot_dimension_numbers<[1], [0], [0], [1], [0, 0, 1, 1], [], []>} : vector<16x32xbf16>, vector<32x24xbf16>, vector<16x24xf32> -> vector<16x24xf32>
    %c0_18 = arith.constant 0 : index
    %c0_19 = arith.constant 0 : index
    %29 = vector.load %arg10[%c0_18, %c0_19] : memref<1x24xf32, #tpu.memory_space<vmem>>, vector<1x24xf32>
    %30 = vector.broadcast %29 : vector<1x24xf32> to vector<16x24xf32>
    %31 = arith.addf %28, %30 : vector<16x24xf32>
    %32 = vector.extract_strided_slice %31 {offsets = [0, 0], sizes = [16, 8], strides = [1, 1]} : vector<16x24xf32> to vector<16x8xf32>
    %33 = vector.extract_strided_slice %31 {offsets = [0, 8], sizes = [16, 8], strides = [1, 1]} : vector<16x24xf32> to vector<16x8xf32>
    %34 = vector.extract_strided_slice %31 {offsets = [0, 16], sizes = [16, 8], strides = [1, 1]} : vector<16x24xf32> to vector<16x8xf32>
    %c0_20 = arith.constant 0 : index
    %c0_21 = arith.constant 0 : index
    %35 = vector.load %arg5[%c0_20, %c0_21] : memref<16x24xf32, #tpu.memory_space<vmem>>, vector<16x24xf32>
    %36 = vector.extract_strided_slice %35 {offsets = [0, 0], sizes = [16, 8], strides = [1, 1]} : vector<16x24xf32> to vector<16x8xf32>
    %37 = vector.extract_strided_slice %35 {offsets = [0, 8], sizes = [16, 8], strides = [1, 1]} : vector<16x24xf32> to vector<16x8xf32>
    %38 = vector.extract_strided_slice %35 {offsets = [0, 16], sizes = [16, 8], strides = [1, 1]} : vector<16x24xf32> to vector<16x8xf32>
    %c0_22 = arith.constant 0 : index
    %c0_23 = arith.constant 0 : index
    %39 = vector.load %arg6[%c0_22, %c0_23] : memref<16x8xf32, #tpu.memory_space<vmem>>, vector<16x8xf32>
    %40 = arith.subf %32, %36 : vector<16x8xf32>
    %41 = arith.subf %33, %37 : vector<16x8xf32>
    %42 = arith.subf %34, %38 : vector<16x8xf32>
    %43 = arith.mulf %40, %40 : vector<16x8xf32>
    %44 = arith.mulf %41, %41 : vector<16x8xf32>
    %45 = arith.addf %43, %44 : vector<16x8xf32>
    %46 = arith.mulf %42, %42 : vector<16x8xf32>
    %47 = arith.addf %45, %46 : vector<16x8xf32>
    %48 = arith.mulf %39, %47 : vector<16x8xf32>
    %49 = vector.shape_cast %48 : vector<16x8xf32> to vector<1x16x8xf32>
    %cst_24 = arith.constant dense<0.000000e+00> : vector<1xf32>
    %50 = vector.multi_reduction <add>, %49, %cst_24 [1, 2] : vector<1x16x8xf32> to vector<1xf32>
    %51 = vector.shape_cast %50 : vector<1xf32> to vector<1x1x1xf32>
    %52 = vector.extract %51[0, 0, 0] : f32 from vector<1x1x1xf32>
    %53 = math.sqrt %47 : vector<16x8xf32>
    %54 = arith.mulf %39, %53 : vector<16x8xf32>
    %55 = vector.shape_cast %54 : vector<16x8xf32> to vector<1x16x8xf32>
    %cst_25 = arith.constant dense<0.000000e+00> : vector<1xf32>
    %56 = vector.multi_reduction <add>, %55, %cst_25 [1, 2] : vector<1x16x8xf32> to vector<1xf32>
    %57 = vector.shape_cast %56 : vector<1xf32> to vector<1x1x1xf32>
    %58 = vector.extract %57[0, 0, 0] : f32 from vector<1x1x1xf32>
    %59 = vector.shape_cast %39 : vector<16x8xf32> to vector<1x16x8xf32>
    %cst_26 = arith.constant dense<0.000000e+00> : vector<1xf32>
    %60 = vector.multi_reduction <add>, %59, %cst_26 [1, 2] : vector<1x16x8xf32> to vector<1xf32>
    %61 = vector.shape_cast %60 : vector<1xf32> to vector<1x1x1xf32>
    %62 = vector.extract %61[0, 0, 0] : f32 from vector<1x1x1xf32>
    %63 = vector.shape_cast %32 : vector<16x8xf32> to vector<16x8x1xf32>
    %64 = vector.shape_cast %32 : vector<16x8xf32> to vector<16x1x8xf32>
    %65 = vector.broadcast %63 : vector<16x8x1xf32> to vector<16x8x8xf32>
    %66 = vector.broadcast %64 : vector<16x1x8xf32> to vector<16x8x8xf32>
    %67 = arith.subf %65, %66 : vector<16x8x8xf32>
    %68 = vector.shape_cast %33 : vector<16x8xf32> to vector<16x8x1xf32>
    %69 = vector.shape_cast %33 : vector<16x8xf32> to vector<16x1x8xf32>
    %70 = vector.broadcast %68 : vector<16x8x1xf32> to vector<16x8x8xf32>
    %71 = vector.broadcast %69 : vector<16x1x8xf32> to vector<16x8x8xf32>
    %72 = arith.subf %70, %71 : vector<16x8x8xf32>
    %73 = vector.shape_cast %34 : vector<16x8xf32> to vector<16x8x1xf32>
    %74 = vector.shape_cast %34 : vector<16x8xf32> to vector<16x1x8xf32>
    %75 = vector.broadcast %73 : vector<16x8x1xf32> to vector<16x8x8xf32>
    %76 = vector.broadcast %74 : vector<16x1x8xf32> to vector<16x8x8xf32>
    %77 = arith.subf %75, %76 : vector<16x8x8xf32>
    %78 = arith.mulf %67, %67 : vector<16x8x8xf32>
    %79 = arith.mulf %72, %72 : vector<16x8x8xf32>
    %80 = arith.addf %78, %79 : vector<16x8x8xf32>
    %81 = arith.mulf %77, %77 : vector<16x8x8xf32>
    %82 = arith.addf %80, %81 : vector<16x8x8xf32>
    %83 = math.sqrt %82 : vector<16x8x8xf32>
    %84 = vector.shape_cast %36 : vector<16x8xf32> to vector<16x8x1xf32>
    %85 = vector.shape_cast %36 : vector<16x8xf32> to vector<16x1x8xf32>
    %86 = vector.broadcast %84 : vector<16x8x1xf32> to vector<16x8x8xf32>
    %87 = vector.broadcast %85 : vector<16x1x8xf32> to vector<16x8x8xf32>
    %88 = arith.subf %86, %87 : vector<16x8x8xf32>
    %89 = vector.shape_cast %37 : vector<16x8xf32> to vector<16x8x1xf32>
    %90 = vector.shape_cast %37 : vector<16x8xf32> to vector<16x1x8xf32>
    %91 = vector.broadcast %89 : vector<16x8x1xf32> to vector<16x8x8xf32>
    %92 = vector.broadcast %90 : vector<16x1x8xf32> to vector<16x8x8xf32>
    %93 = arith.subf %91, %92 : vector<16x8x8xf32>
    %94 = vector.shape_cast %38 : vector<16x8xf32> to vector<16x8x1xf32>
    %95 = vector.shape_cast %38 : vector<16x8xf32> to vector<16x1x8xf32>
    %96 = vector.broadcast %94 : vector<16x8x1xf32> to vector<16x8x8xf32>
    %97 = vector.broadcast %95 : vector<16x1x8xf32> to vector<16x8x8xf32>
    %98 = arith.subf %96, %97 : vector<16x8x8xf32>
    %99 = arith.mulf %88, %88 : vector<16x8x8xf32>
    %100 = arith.mulf %93, %93 : vector<16x8x8xf32>
    %101 = arith.addf %99, %100 : vector<16x8x8xf32>
    %102 = arith.mulf %98, %98 : vector<16x8x8xf32>
    %103 = arith.addf %101, %102 : vector<16x8x8xf32>
    %104 = math.sqrt %103 : vector<16x8x8xf32>
    %105 = tpu.iota {dimensions = array<i32: 0>} : vector<8x8xi32>
    %106 = tpu.iota {dimensions = array<i32: 1>} : vector<8x8xi32>
    %107 = arith.cmpi eq, %105, %106 : vector<8x8xi32>
    %cst_27 = arith.constant 0.000000e+00 : f32
    %cst_28 = arith.constant 1.000000e+00 : f32
    %108 = vector.broadcast %cst_27 : f32 to vector<8x8xf32>
    %109 = vector.broadcast %cst_28 : f32 to vector<8x8xf32>
    %110 = arith.select %107, %108, %109 : vector<8x8xi1>, vector<8x8xf32>
    %111 = vector.shape_cast %110 : vector<8x8xf32> to vector<1x8x8xf32>
    %112 = vector.shape_cast %39 : vector<16x8xf32> to vector<16x8x1xf32>
    %113 = vector.shape_cast %39 : vector<16x8xf32> to vector<16x1x8xf32>
    %114 = vector.broadcast %112 : vector<16x8x1xf32> to vector<16x8x8xf32>
    %115 = vector.broadcast %113 : vector<16x1x8xf32> to vector<16x8x8xf32>
    %116 = arith.mulf %114, %115 : vector<16x8x8xf32>
    %117 = vector.broadcast %111 : vector<1x8x8xf32> to vector<16x8x8xf32>
    %118 = arith.mulf %116, %117 : vector<16x8x8xf32>
    %119 = arith.subf %83, %104 : vector<16x8x8xf32>
    %120 = arith.mulf %118, %119 : vector<16x8x8xf32>
    %121 = arith.mulf %120, %119 : vector<16x8x8xf32>
    %122 = vector.shape_cast %121 : vector<16x8x8xf32> to vector<1x16x8x8xf32>
    %cst_29 = arith.constant dense<0.000000e+00> : vector<1xf32>
    %123 = vector.multi_reduction <add>, %122, %cst_29 [1, 2, 3] : vector<1x16x8x8xf32> to vector<1xf32>
    %124 = vector.shape_cast %123 : vector<1xf32> to vector<1x1x1x1xf32>
    %125 = vector.extract %124[0, 0, 0, 0] : f32 from vector<1x1x1x1xf32>
    %126 = vector.shape_cast %118 : vector<16x8x8xf32> to vector<1x16x8x8xf32>
    %cst_30 = arith.constant dense<0.000000e+00> : vector<1xf32>
    %127 = vector.multi_reduction <add>, %126, %cst_30 [1, 2, 3] : vector<1x16x8x8xf32> to vector<1xf32>
    %128 = vector.shape_cast %127 : vector<1xf32> to vector<1x1x1x1xf32>
    %129 = vector.extract %128[0, 0, 0, 0] : f32 from vector<1x1x1x1xf32>
    %130 = tpu.iota {dimensions = array<i32: 2>} : vector<1x1x8xi32>
    %cst_31 = arith.constant 0.000000e+00 : f32
    %131 = vector.broadcast %cst_31 : f32 to vector<1x1x8xf32>
    %c0_i32 = arith.constant 0 : i32
    %132 = vector.broadcast %c0_i32 : i32 to vector<1x1x8xi32>
    %133 = arith.cmpi eq, %130, %132 : vector<1x1x8xi32>
    %cst_32 = arith.constant 0.000000e+00 : f32
    %134 = vector.broadcast %25 : f32 to vector<1x1x8xf32>
    %135 = vector.broadcast %cst_32 : f32 to vector<1x1x8xf32>
    %136 = arith.select %133, %134, %135 : vector<1x1x8xi1>, vector<1x1x8xf32>
    %137 = arith.addf %131, %136 : vector<1x1x8xf32>
    %c1_i32 = arith.constant 1 : i32
    %138 = vector.broadcast %c1_i32 : i32 to vector<1x1x8xi32>
    %139 = arith.cmpi eq, %130, %138 : vector<1x1x8xi32>
    %cst_33 = arith.constant 0.000000e+00 : f32
    %140 = vector.broadcast %52 : f32 to vector<1x1x8xf32>
    %141 = vector.broadcast %cst_33 : f32 to vector<1x1x8xf32>
    %142 = arith.select %139, %140, %141 : vector<1x1x8xi1>, vector<1x1x8xf32>
    %143 = arith.addf %137, %142 : vector<1x1x8xf32>
    %c2_i32 = arith.constant 2 : i32
    %144 = vector.broadcast %c2_i32 : i32 to vector<1x1x8xi32>
    %145 = arith.cmpi eq, %130, %144 : vector<1x1x8xi32>
    %cst_34 = arith.constant 0.000000e+00 : f32
    %146 = vector.broadcast %58 : f32 to vector<1x1x8xf32>
    %147 = vector.broadcast %cst_34 : f32 to vector<1x1x8xf32>
    %148 = arith.select %145, %146, %147 : vector<1x1x8xi1>, vector<1x1x8xf32>
    %149 = arith.addf %143, %148 : vector<1x1x8xf32>
    %c3_i32 = arith.constant 3 : i32
    %150 = vector.broadcast %c3_i32 : i32 to vector<1x1x8xi32>
    %151 = arith.cmpi eq, %130, %150 : vector<1x1x8xi32>
    %cst_35 = arith.constant 0.000000e+00 : f32
    %152 = vector.broadcast %62 : f32 to vector<1x1x8xf32>
    %153 = vector.broadcast %cst_35 : f32 to vector<1x1x8xf32>
    %154 = arith.select %151, %152, %153 : vector<1x1x8xi1>, vector<1x1x8xf32>
    %155 = arith.addf %149, %154 : vector<1x1x8xf32>
    %c4_i32 = arith.constant 4 : i32
    %156 = vector.broadcast %c4_i32 : i32 to vector<1x1x8xi32>
    %157 = arith.cmpi eq, %130, %156 : vector<1x1x8xi32>
    %cst_36 = arith.constant 0.000000e+00 : f32
    %158 = vector.broadcast %125 : f32 to vector<1x1x8xf32>
    %159 = vector.broadcast %cst_36 : f32 to vector<1x1x8xf32>
    %160 = arith.select %157, %158, %159 : vector<1x1x8xi1>, vector<1x1x8xf32>
    %161 = arith.addf %155, %160 : vector<1x1x8xf32>
    %c5_i32 = arith.constant 5 : i32
    %162 = vector.broadcast %c5_i32 : i32 to vector<1x1x8xi32>
    %163 = arith.cmpi eq, %130, %162 : vector<1x1x8xi32>
    %cst_37 = arith.constant 0.000000e+00 : f32
    %164 = vector.broadcast %129 : f32 to vector<1x1x8xf32>
    %165 = vector.broadcast %cst_37 : f32 to vector<1x1x8xf32>
    %166 = arith.select %163, %164, %165 : vector<1x1x8xi1>, vector<1x1x8xf32>
    %167 = arith.addf %161, %166 : vector<1x1x8xf32>
    %c0_38 = arith.constant 0 : index
    %c0_39 = arith.constant 0 : index
    %c0_40 = arith.constant 0 : index
    %168 = vector.load %arg12[%c0_38, %c0_39, %c0_40] : memref<1x1x8xf32, #tpu.memory_space<vmem>>, vector<1x1x8xf32>
    tpu.vector_store %arg12[%c0_38, %c0_39, %c0_40], %167 {strides = array<i32>} : memref<1x1x8xf32, #tpu.memory_space<vmem>>, vector<1x1x8xf32>,
    return
  }
  func.func @transform_0(%arg0: i32) -> (i32, i32) {
    %c0_i32 = arith.constant 0 : i32
    %c0_i32_0 = arith.constant 0 : i32
    return %arg0, %c0_i32 : i32, i32
  }
  func.func @transform_1(%arg0: i32) -> (i32, i32) {
    %c0_i32 = arith.constant 0 : i32
    %c0_i32_0 = arith.constant 0 : i32
    return %arg0, %c0_i32 : i32, i32
  }
  func.func @transform_2(%arg0: i32) -> (i32, i32) {
    %c0_i32 = arith.constant 0 : i32
    %c0_i32_0 = arith.constant 0 : i32
    return %arg0, %c0_i32 : i32, i32
  }
  func.func @transform_3(%arg0: i32) -> (i32, i32) {
    %c0_i32 = arith.constant 0 : i32
    %c0_i32_0 = arith.constant 0 : i32
    return %arg0, %c0_i32 : i32, i32
  }
  func.func @transform_4(%arg0: i32) -> (i32, i32) {
    %c0_i32 = arith.constant 0 : i32
    %c0_i32_0 = arith.constant 0 : i32
    return %arg0, %c0_i32 : i32, i32
  }
  func.func @transform_5(%arg0: i32) -> (i32, i32) {
    %c0_i32 = arith.constant 0 : i32
    %c0_i32_0 = arith.constant 0 : i32
    return %arg0, %c0_i32 : i32, i32
  }
  func.func @transform_6(%arg0: i32) -> (i32, i32) {
    %c0_i32 = arith.constant 0 : i32
    %c0_i32_0 = arith.constant 0 : i32
    %c0_i32_1 = arith.constant 0 : i32
    return %c0_i32, %c0_i32_0 : i32, i32
  }
  func.func @transform_7(%arg0: i32) -> (i32, i32) {
    %c0_i32 = arith.constant 0 : i32
    %c0_i32_0 = arith.constant 0 : i32
    %c0_i32_1 = arith.constant 0 : i32
    return %c0_i32, %c0_i32_0 : i32, i32
  }
  func.func @transform_8(%arg0: i32) -> (i32, i32) {
    %c0_i32 = arith.constant 0 : i32
    %c0_i32_0 = arith.constant 0 : i32
    %c0_i32_1 = arith.constant 0 : i32
    return %c0_i32, %c0_i32_0 : i32, i32
  }
  func.func @transform_9(%arg0: i32) -> (i32, i32) {
    %c0_i32 = arith.constant 0 : i32
    %c0_i32_0 = arith.constant 0 : i32
    %c0_i32_1 = arith.constant 0 : i32
    return %c0_i32, %c0_i32_0 : i32, i32
  }
  func.func @transform_10(%arg0: i32) -> (i32, i32) {
    %c0_i32 = arith.constant 0 : i32
    %c0_i32_0 = arith.constant 0 : i32
    return %arg0, %c0_i32 : i32, i32
  }
  func.func @transform_11(%arg0: i32) -> (i32, i32, i32) {
    %c0_i32 = arith.constant 0 : i32
    %c0_i32_0 = arith.constant 0 : i32
    %c0_i32_1 = arith.constant 0 : i32
    return %arg0, %c0_i32, %c0_i32_0 : i32, i32, i32
  }
}

</mosaic_0001>

<bundles_post_ra>
// kernel: tpu_custom_call.1
= control target key start
LH: loop header
LB: loop body
LE: loop exit
PB: predicated region body
PF: predicated region fallthrough
CT: control target
= control target key end

     0   :  { %17 = vsyncpa [#allocation3], 0  ;;  %v2589_v2 = vmov 0   ;;  %v4071_v4 = vlaneseq  ;;  %v2590_v5 = vmov 0.0   ;;  %vm2591_vm0 = vmmov 0   ;;  %s4059_s0 = inlined_call_operand.vmem [shape: f32[16,32], index: 0, kind: input, shape index: {}]   ;;  %s4060_s1 = inlined_call_operand.vmem [shape: f32[16,32], index: 1, kind: input, shape index: {}]   ;;  %s4061_s2 = inlined_call_operand.vmem [shape: f32[16,1], index: 2, kind: input, shape index: {}]   ;;  %s4062_s3 = inlined_call_operand.vmem [shape: f32[16,1], index: 3, kind: input, shape index: {}]   ;;  %s4063_s4 = inlined_call_operand.vmem [shape: f32[16,24], index: 4, kind: input, shape index: {}]   ;;  %s4064_s5 = inlined_call_operand.vmem [shape: f32[16,8], index: 5, kind: input, shape index: {}]   ;;  %s4065_s6 = inlined_call_operand.vmem [shape: bf16[32,32], index: 6, kind: input, shape index: {}]   ;;  %s4066_s7 = inlined_call_operand.vmem [shape: f32[1,32], index: 7, kind: input, shape index: {}]   ;;  %s4067_s8 = inlined_call_operand.vmem [shape: bf16[32,24], index: 8, kind: input, shape index: {}]   ;;  %s4068_s9 = inlined_call_operand.vmem [shape: f32[1,24], index: 9, kind: input, shape index: {}]   ;;  %s4069_s10 = inlined_call_operand.hbm [shape: f32[16,32], index: 10, kind: output, shape index: {0}]   ;;  %s4070_s11 = inlined_call_operand.hbm [shape: f32[1,1,8], index: 11, kind: output, shape index: {1}]  }
   0x1   :  { %v44_v0 = vld [vmem:[%s4061_s2] sm:$0xff]  ;;  %v45_v1 = vld [vmem:[%s4061_s2 + $0x8] sm:$0xff]  ;;  %2467 = vset.pattern.permute.xlu0 %v2589_v2  ;;  %2468 = vset.pattern.permute.xlu1 %v2589_v2 }
   0x2   :  { %v60_v3 = vsub.f32 1.0, %v44_v0  ;;  %50 = vperm.xlu0 %2467, %v44_v0   ;;  %2428 = vmatprep.subr.bf16.mxu0 %v2590_v5  ;;  %v61_v6 = vsub.f32 1.0, %v45_v1  ;;  %v2469_v7 = vld [vmem:[%s4065_s6 + $0x8] sm:$0xff]   ;;  %v46_v8 = vld [vmem:[%s4062_s3] sm:$0xff]  ;;  %v2675_v9 = vshrl.u32 %v4071_v4, 7 }
   0x3   :  { %2436 = vmatprep.subr.bf16.mxu1 %v2590_v5  ;;  %2429 = vmatpush3.bf16.msra.mxu0 %v2469_v7  ;;  %v2470_v10 = vld [vmem:[%s4065_s6] sm:$0xff]   ;;  %v47_v11 = vld [vmem:[%s4062_s3 + $0x8] sm:$0xff] }
   0x4   :  { %64 = vperm.xlu1 %2468, %v60_v3   ;;  %2430 = vmatprep.subr.bf16.mxu0 %v2590_v5 }
   0x5   :  { %2432 = vmatprep.mubr.msk.bf16.mxu0 %vm2591_vm0, %v2590_v5 }
   0x6   :  { %55 = vperm.xlu0 %2467, %v45_v1  }
   0x8   :  { %69 = vperm.xlu1 %2468, %v61_v6  }
   0x9   :  { %18 = vsyncpa [#allocation5], 0  ;;  %v2686_v12 = vsub.s32 1, %v2675_v9  ;;  %2440 = vmatprep.mubr.msk.bf16.mxu1 %vm2591_vm0, %v2590_v5  ;;  %2431 = vmatpush3.bf16.msra.mxu0 %v2470_v10  ;;  %v2692_v13 = vld [vmem:[%s4063_s4] sm:$0xff]  ;;  %v2695_v14 = vsub.s32 0, %v2675_v9  ;;  %v2704_v17 = vsub.s32 2, %v2675_v9 }
   0xa   :  { %151 = vperm.xlu0 %2467, %v46_v8   ;;  %v2708_v18 = vsub.s32 4, %v2675_v9  ;;  %v2718_v21 = vsub.s32 6, %v2675_v9  ;;  %v2723_v22 = vld [vmem:[%s4064_s5] sm:$0xff]  ;;  %v246_v23 = vld [vmem:[%s4064_s5 + $0x8] sm:$0xff]  ;;  %vm271_vm1 = vcmask 64512   ;;  %v2755_v32 = vsub.s32 3, %v2675_v9 }
   0xb   :  { %v1122_v15 = vrot.slane %v2692_v13, %v2686_v12  ;;  %v2701_v16 = vrot.slane %v2692_v13, %v2695_v14  ;;  %v2712_v19 = vrot.slane %v2692_v13, %v2704_v17  ;;  %v312_v25 = vsel %vm271_vm1, %v2723_v22, 0.0  ;;  %v2739_v27 = vld [vmem:[%s4063_s4 + $0x8] sm:$0xff]  ;;  %v2809_v48 = vld [vmem:[%s4059_s0] sm:$0xff] }
   0xc   :  { %156 = vperm.xlu1 %2468, %v47_v11   ;;  %v1143_v20 = vrot.slane %v2692_v13, %v2708_v18  ;;  %v2730_v24 = vrot.slane %v2692_v13, %v2718_v21  ;;  %v313_v26 = vsel %vm271_vm1, %v246_v23, 0.0  ;;  %v2744_v29 = vrot.slane %v2739_v27, %v2695_v14  ;;  %v42_v50 = vld [vmem:[%s4060_s1] sm:$0xff]  ;;  %v2817_v51 = vld [vmem:[%s4059_s0 + $0x8] sm:$0xff]  ;;  %s2593_s0 = smov 120  }
   0xd   :  { %v314_v28 = vadd.f32 %v313_v26, %v312_v25  ;;  %v1178_v30 = vrot.slane %v2739_v27, %v2686_v12  ;;  %v2752_v31 = vrot.slane %v2739_v27, %v2704_v17  ;;  %v2760_v33 = vrot.slane %v2739_v27, %v2755_v32  ;;  %v43_v53 = vld [vmem:[%s4060_s1 + $0x8] sm:$0xff]  ;;  %s2594_s1 = smov 112  }
   0xe   :  { %v2765_v34 = vrot.slane %v2739_v27, %v2708_v18  ;;  %v2769_v35 = vsub.s32 5, %v2675_v9  ;;  %v2780_v37 = vrot.slane %v2739_v27, %v2718_v21  ;;  %v1136_v38 = vrot.slane %v2692_v13, %v2755_v32 }
   0xf   :  { %v2785_v39 = vsub.s32 7, %v2675_v9  ;;  %v2592_v43 = vmov 1966171168   ;;  %vm100_vm2 = vcmask 261120   ;;  %v1226_v6 = vcombine.high %v2692_v13, %v2692_v13 }
  0x10   :  { %1426 = vbcast.lane.b32.xlu1 %v1122_v15, 264  ;;  %v2774_v36 = vrot.slane %v2739_v27, %v2769_v35  ;;  %v1150_v41 = vrot.slane %v2692_v13, %v2769_v35  ;;  %v440_v44 = vunpack.c.l.s4 %v2592_v43 }
  0x11   :  { %4082 = vst [vmem:[#allocation8_spill] sm:$0xff] %v2785_v39  ;;  %v2790_v40 = vrot.slane %v2739_v27, %v2785_v39  ;;  %v1164_v42 = vrot.slane %v2692_v13, %v2785_v39 }
  0x12   :  { %v441_v45 = vunpack.c.0.s8 %v440_v44 }
  0x14   :  { %1502 = vbcast.lane.b32.xlu1 %v2701_v16, 272  ;;  %v2804_v46 = vsub.s32 %v441_v45, %v2675_v9 }
  0x16   :  { %v1233_v52 = vrot.slane %v2692_v13, %v2804_v46 }
  0x18   :  { %1510 = vbcast.lane.b32.xlu1 %v2712_v19, 272  ;;  %v1241_v57 = vcombine.high %v1233_v52, %v1233_v52  ;;  %v1249_v2 = vrot.slane %v1233_v52, %v2804_v46 }
  0x1a   :  { %v2829_v63 = vrot.slane %v1241_v57, %v2804_v46  ;;  %v2845_v10 = vrot.slane %v1249_v2, %v2695_v14  ;;  %v1271_v11 = vcombine.high %v1249_v2, %v1249_v2 }
  0x1c   :  { %1438 = vbcast.lane.b32.xlu1 %v1143_v20, 264  ;;  %v2838_v3 = vrot.slane %v2829_v63, %v2695_v14 }
  0x20   :  { %1518 = vbcast.lane.b32.xlu1 %v1143_v20, 272 }
  0x24   :  { %1446 = vbcast.lane.b32.xlu1 %v2730_v24, 264 }
  0x28   :  { %1526 = vbcast.lane.b32.xlu1 %v2730_v24, 272 }
  0x29   :  { %315 = vadd.xlane.f32.xlu0 %v314_v28 }
  0x2c   :  { %1454 = vbcast.lane.b32.xlu1 %v2744_v29, 264 }
  0x30   :  { %1534 = vbcast.lane.b32.xlu1 %v2744_v29, 272 }
  0x34   :  { %1538 = vbcast.lane.b32.xlu1 %v1178_v30, 272 }
  0x38   :  { %1542 = vbcast.lane.b32.xlu1 %v2752_v31, 272 }
  0x3c   :  { %1546 = vbcast.lane.b32.xlu1 %v2760_v33, 272 }
  0x3f   :  { %1422 = vbcast.lane.b32.xlu0 %v2701_v16, 264 }
  0x40   :  { %1550 = vbcast.lane.b32.xlu1 %v2765_v34, 272 }
  0x43   :  { %1430 = vbcast.lane.b32.xlu0 %v2712_v19, 264 }
  0x44   :  { %1554 = vbcast.lane.b32.xlu1 %v2774_v36, 272 }
  0x47   :  { %1506 = vbcast.lane.b32.xlu0 %v1122_v15, 272 }
  0x48   :  { %1558 = vbcast.lane.b32.xlu1 %v2780_v37, 272 }
  0x4b   :  { %1434 = vbcast.lane.b32.xlu0 %v1136_v38, 264 }
  0x4c   :  { %1562 = vbcast.lane.b32.xlu1 %v2790_v40, 272 }
  0x4f   :  { %1514 = vbcast.lane.b32.xlu0 %v1136_v38, 272 }
  0x50   :  { %1124 = vbcast.lane.b32.xlu1 %v1122_v15, 256 }
  0x53   :  { %1442 = vbcast.lane.b32.xlu0 %v1150_v41, 264 }
  0x54   :  { %1138 = vbcast.lane.b32.xlu1 %v1136_v38, 256 }
  0x57   :  { %1522 = vbcast.lane.b32.xlu0 %v1150_v41, 272 }
  0x58   :  { %1145 = vbcast.lane.b32.xlu1 %v1143_v20, 256 }
  0x5b   :  { %1450 = vbcast.lane.b32.xlu0 %v1164_v42, 264 }
  0x5c   :  { %1152 = vbcast.lane.b32.xlu1 %v1150_v41, 256 }
  0x5f   :  { %1530 = vbcast.lane.b32.xlu0 %v1164_v42, 272 }
  0x60   :  { %1166 = vbcast.lane.b32.xlu1 %v1164_v42, 256 }
  0x63   :  { %1458 = vbcast.lane.b32.xlu0 %v1178_v30, 264 }
  0x64   :  { %1180 = vbcast.lane.b32.xlu1 %v1178_v30, 256 }
  0x67   :  { %1462 = vbcast.lane.b32.xlu0 %v2752_v31, 264 }
  0x6b   :  { %1466 = vbcast.lane.b32.xlu0 %v2760_v33, 264 }
  0x6f   :  { %1470 = vbcast.lane.b32.xlu0 %v2765_v34, 264 }
  0x73   :  { %1474 = vbcast.lane.b32.xlu0 %v2774_v36, 264 }
  0x77   :  { %1478 = vbcast.lane.b32.xlu0 %v2780_v37, 264 }
  0x7b   :  { %1482 = vbcast.lane.b32.xlu0 %v2790_v40, 264 }
  0x7d   :  { %v51_v47 = vpop.permute.xlu0 %50 }
  0x7e   :  { %v58_v54 = vmul.f32 %v51_v47, %v2809_v48 }
  0x7f   :  { %v65_v49 = vpop.permute.xlu1 %64  ;;  %1117 = vbcast.lane.b32.xlu0 %v2701_v16, 256  ;;  %v2848_v16 = vrot.slane %v1226_v6, %v2804_v46 }
  0x80   :  { %v72_v55 = vmul.f32 %v65_v49, %v42_v50  ;;  %v2871_v50 = vrot.slane %v2739_v27, %v2804_v46 }
  0x81   :  { %v56_v56 = vpop.permute.xlu0 %55  ;;  %v1256_v23 = vrot.slane %v2848_v16, %v2804_v46 }
  0x82   :  { %v59_v58 = vmul.f32 %v56_v56, %v2817_v51  ;;  %v74_v61 = vadd.f32 %v72_v55, %v58_v54  ;;  %v2876_v54 = vrot.slane %v2871_v50, %v2804_v46 }
  0x83   :  { %v70_v59 = vpop.permute.xlu1 %69  ;;  %1131 = vbcast.lane.b32.xlu0 %v2712_v19, 256  ;;  %v1272_v42 = vcombine.high %v1256_v23, %v1256_v23 }
  0x84   :  { %v73_v60 = vmul.f32 %v70_v59, %v43_v53 }
  0x85   :  { %v2866_v47 = vrot.slane %v1272_v42, %v2695_v14  ;;  %v2889_v6 = vpop.permute.xlu0 %151 }
  0x86   :  { %v75_v62 = vadd.f32 %v73_v60, %v59_v58  ;;  %v2882_v58 = vrot.slane %v2876_v54, %v2695_v14 }
  0x87   :  { %v2831_v0 = vpop.permute.xlu1 %156  ;;  %1159 = vbcast.lane.b32.xlu0 %v2730_v24, 256  ;;  %v2855_v24 = vrot.slane %v1271_v11, %v2695_v14 }
  0x88   :  { %v76_v1 = vpack.c.bf16 %v75_v62, %v74_v61  ;;  %4083 = vst [vmem:[#allocation9_spill] sm:$0xff] %v2882_v58 }
  0x8a   :  { %2433 = vmatmul.mubr.msk.bf16.vlgmr.msra.gmra.mxu0 %vm100_vm2, %v76_v1 }
  0x8b   :  { %v1427_v7 = vpop.permute.xlu1 %1426  ;;  %1173 = vbcast.lane.b32.xlu0 %v2744_v29, 256  ;;  %v2859_v29 = vrot.slane %v1256_v23, %v2695_v14 }
  0x8c   :  { %v1485_v8 = vsub.f32 %v1427_v7, %v2838_v3 }
  0x8e   :  { %v1597_v15 = vmul.f32 %v1485_v8, %v1485_v8 }
  0x8f   :  { %v1503_v19 = vpop.permute.xlu1 %1502 }
  0x90   :  { %v1564_v20 = vsub.f32 %v1503_v19, %v2845_v10  ;;  %1630 = vrot.lane.b32.xlu1 %v1597_v15, %s2593_s0 }
  0x92   :  { %v1692_v25 = vmul.f32 %v1564_v20, %v1564_v20 }
  0x93   :  { %v1511_v26 = vpop.permute.xlu1 %1510 }
  0x94   :  { %v1566_v28 = vsub.f32 %v1511_v26, %v2855_v24  ;;  %1724 = vrot.lane.b32.xlu1 %v1692_v25, %s2594_s1  ;;  %v1273_v25 = vcombine.high %v2829_v63, %v2829_v63 }
  0x96   :  { %v1694_v30 = vmul.f32 %v1566_v28, %v1566_v28 }
  0x97   :  { %v1439_v38 = vpop.permute.xlu1 %1438 }
  0x98   :  { %v1488_v41 = vsub.f32 %v1439_v38, %v2859_v29  ;;  %1728 = vrot.lane.b32.xlu1 %v1694_v30, %s2594_s1  ;;  %v2903_v30 = vrot.slane %v1273_v25, %v2695_v14  ;;  %v1242_v38 = vcombine.high %v2848_v16, %v2848_v16  ;;  %v2473_v16 = vld [vmem:[%s4067_s8 + $0x8] sm:$0xff]  }
  0x99   :  { %2437 = vmatpush3.bf16.msra.mxu1 %v2473_v16 }
  0x9a   :  { %v1600_v43 = vmul.f32 %v1488_v41, %v1488_v41  ;;  %v1270_v63 = vrot.slane %v1242_v38, %v2804_v46  ;;  %2438 = vmatprep.subr.bf16.mxu1 %v2590_v5 }
  0x9b   :  { %v1519_v44 = vpop.permute.xlu1 %1518 }
  0x9c   :  { %v1568_v45 = vsub.f32 %v1519_v44, %v2859_v29  ;;  %1636 = vrot.lane.b32.xlu1 %v1600_v43, %s2593_s0 }
  0x9e   :  { %v1696_v49 = vmul.f32 %v1568_v45, %v1568_v45 }
  0x9f   :  { %v1447_v52 = vpop.permute.xlu1 %1446 }
  0xa0   :  { %v1490_v53 = vsub.f32 %v1447_v52, %v2866_v47  ;;  %1732 = vrot.lane.b32.xlu1 %v1696_v49, %s2594_s1  ;;  %v2913_v52 = vrot.slane %v1270_v63, %v2695_v14 }
  0xa2   :  { %v1602_v55 = vmul.f32 %v1490_v53, %v1490_v53 }
  0xa3   :  { %v1527_v56 = vpop.permute.xlu1 %1526 }
  0xa4   :  { %v1570_v57 = vsub.f32 %v1527_v56, %v2866_v47  ;;  %1640 = vrot.lane.b32.xlu1 %v1602_v55, %s2593_s0 }
  0xa6   :  { %v1698_v59 = vmul.f32 %v1570_v57, %v1570_v57  ;;  %v1274_v57 = vcombine.high %v1270_v63, %v1270_v63 }
  0xa7   :  { %v1455_v60 = vpop.permute.xlu1 %1454 }
  0xa8   :  { %v1492_v61 = vsub.f32 %v1455_v60, %v2882_v58  ;;  %1736 = vrot.lane.b32.xlu1 %v1698_v59, %s2594_s1  ;;  %v2474_v60 = vld [vmem:[%s4067_s8] sm:$0xff]  }
  0xa9   :  { %2439 = vmatpush3.bf16.msra.mxu1 %v2474_v60 }
  0xaa   :  { %v1604_v62 = vmul.f32 %v1492_v61, %v1492_v61 }
  0xab   :  { %v1535_v1 = vpop.permute.xlu1 %1534 }
  0xac   :  { %v1572_v2 = vsub.f32 %v1535_v1, %v2882_v58  ;;  %1644 = vrot.lane.b32.xlu1 %v1604_v62, %s2593_s0  ;;  %v2927_v1 = vrot.slane %v1274_v57, %v2695_v14 }
  0xae   :  { %v1700_v7 = vmul.f32 %v1572_v2, %v1572_v2  ;;  %v1290_v2 = vcombine.high %v2871_v50, %v2871_v50  ;;  %v1320_v50 = vcombine.high %v2876_v54, %v2876_v54 }
  0xb0   :  { %1194 = vbcast.lane.b32.xlu1 %v2760_v33, 256  ;;  %v2944_v38 = vrot.slane %v1320_v50, %v2695_v14 }
  0xb2   :  { %v2892_v8 = vpop.xlane.xlu0 %315  ;;  %4086 = vst [vmem:[#allocation12_spill] sm:$0xff] %v2944_v38 }
  0xb3   :  { %4084 = vst [vmem:[#allocation10_spill] sm:$0xff] %v2892_v8 }
  0xb4   :  { %1740 = vrot.lane.b32.xlu1 %v1700_v7, %s2594_s1 }
  0xb6   :  { %v1423_v11 = vpop.permute.xlu0 %1422 }
  0xb7   :  { %v1484_v15 = vsub.f32 %v1423_v11, %v2845_v10 }
  0xb9   :  { %v1596_v19 = vmul.f32 %v1484_v15, %v1484_v15  ;;  %v1312_v15 = vrot.slane %v1290_v2, %v2804_v46 }
  0xba   :  { %v1431_v20 = vpop.permute.xlu0 %1430 }
  0xbb   :  { %v1486_v23 = vsub.f32 %v1431_v20, %v2855_v24  ;;  %1628 = vrot.lane.b32.xlu0 %v1596_v19, %s2593_s0  ;;  %v2937_v25 = vrot.slane %v1312_v15, %v2695_v14  ;;  %v1322_v54 = vcombine.high %v1312_v15, %v1312_v15 }
  0xbd   :  { %v1598_v26 = vmul.f32 %v1486_v23, %v1486_v23  ;;  %4085 = vst [vmem:[#allocation11_spill] sm:$0xff] %v2937_v25  ;;  %v2954_v16 = vrot.slane %v1322_v54, %v2695_v14 }
  0xbe   :  { %v1507_v28 = vpop.permute.xlu0 %1506 }
  0xbf   :  { %v1565_v33 = vsub.f32 %v1507_v28, %v2838_v3  ;;  %1632 = vrot.lane.b32.xlu0 %v1598_v26, %s2593_s0  ;;  %4087 = vst [vmem:[#allocation13_spill] sm:$0xff] %v2954_v16 }
  0xc1   :  { %v1693_v41 = vmul.f32 %v1565_v33, %v1565_v33 }
  0xc2   :  { %v1435_v42 = vpop.permute.xlu0 %1434 }
  0xc3   :  { %v1487_v43 = vsub.f32 %v1435_v42, %v2903_v30  ;;  %1726 = vrot.lane.b32.xlu0 %v1693_v41, %s2594_s1  ;;  %v1275_v41 = vcombine.high %v2739_v27, %v2739_v27 }
  0xc5   :  { %v1599_v44 = vmul.f32 %v1487_v43, %v1487_v43  ;;  %v1539_v43 = vpop.permute.xlu1 %1538 }
  0xc6   :  { %v1515_v45 = vpop.permute.xlu0 %1514 }
  0xc7   :  { %v1567_v49 = vsub.f32 %v1515_v45, %v2903_v30  ;;  %1634 = vrot.lane.b32.xlu0 %v1599_v44, %s2593_s0 }
  0xc9   :  { %v1695_v53 = vmul.f32 %v1567_v49, %v1567_v49  ;;  %v1289_v49 = vrot.slane %v1275_v41, %v2804_v46 }
  0xca   :  { %v1443_v55 = vpop.permute.xlu0 %1442 }
  0xcb   :  { %v1489_v56 = vsub.f32 %v1443_v55, %v2913_v52  ;;  %1730 = vrot.lane.b32.xlu0 %v1695_v53, %s2594_s1  ;;  %v1573_v53 = vsub.f32 %v1539_v43, %v2937_v25  ;;  %v1305_v57 = vrot.slane %v1289_v49, %v2804_v46 }
  0xcd   :  { %v1601_v59 = vmul.f32 %v1489_v56, %v1489_v56  ;;  %v1701_v60 = vmul.f32 %v1573_v53, %v1573_v53  ;;  %v2963_v2 = vrot.slane %v1305_v57, %v2695_v14 }
  0xce   :  { %v1523_v61 = vpop.permute.xlu0 %1522 }
  0xcf   :  { %v1569_v62 = vsub.f32 %v1523_v61, %v2913_v52  ;;  %1638 = vrot.lane.b32.xlu0 %v1601_v59, %s2593_s0  ;;  %v1291_v59 = vcombine.high %v1289_v49, %v1289_v49  ;;  %4088 = vst [vmem:[#allocation14_spill] sm:$0xff] %v2963_v2 }
  0xd1   :  { %v1697_v7 = vmul.f32 %v1569_v62, %v1569_v62 }
  0xd2   :  { %v1451_v11 = vpop.permute.xlu0 %1450 }
  0xd3   :  { %v1491_v5 = vsub.f32 %v1451_v11, %v2927_v1  ;;  %1734 = vrot.lane.b32.xlu0 %v1697_v7, %s2594_s1  ;;  %v1319_v11 = vrot.slane %v1291_v59, %v2804_v46 }
  0xd5   :  { %v1603_v19 = vmul.f32 %v1491_v5, %v1491_v5 }
  0xd6   :  { %v1531_v20 = vpop.permute.xlu0 %1530 }
  0xd7   :  { %1642 = vrot.lane.b32.xlu0 %v1603_v19, %s2593_s0  ;;  %v1571_v23 = vsub.f32 %v1531_v20, %v2927_v1  ;;  %v2975_v20 = vrot.slane %v1319_v11, %v2695_v14 }
  0xd9   :  { %v1699_v28 = vmul.f32 %v1571_v23, %v1571_v23  ;;  %4089 = vst [vmem:[#allocation15_spill] sm:$0xff] %v2975_v20 }
  0xda   :  { %v1459_v26 = vpop.permute.xlu0 %1458 }
  0xdb   :  { %1187 = vbcast.lane.b32.xlu0 %v2752_v31, 256  ;;  %v1493_v33 = vsub.f32 %v1459_v26, %v2937_v25  ;;  %v1543_v31 = vpop.permute.xlu1 %1542 }
  0xdc   :  { %v1574_v55 = vsub.f32 %v1543_v31, %v2944_v38 }
  0xdd   :  { %v1605_v63 = vmul.f32 %v1493_v33, %v1493_v33  ;;  %v1923_v33 = vrot.slane %v2723_v22, %v2704_v17 }
  0xde   :  { %v1463_v42 = vpop.permute.xlu0 %1462  ;;  %v1702_v62 = vmul.f32 %v1574_v55, %v1574_v55 }
  0xdf   :  { %1738 = vrot.lane.b32.xlu0 %v1699_v28, %s2594_s1  ;;  %v1494_v44 = vsub.f32 %v1463_v42, %v2944_v38  ;;  %v1547_v23 = vpop.permute.xlu1 %1546  ;;  %v1321_v42 = vcombine.high %v1305_v57, %v1305_v57 }
  0xe0   :  { %v1575_v26 = vsub.f32 %v1547_v23, %v2954_v16 }
  0xe1   :  { %v1606_v45 = vmul.f32 %v1494_v44, %v1494_v44  ;;  %v1323_v44 = vcombine.high %v1319_v11, %v1319_v11 }
  0xe2   :  { %v1467_v56 = vpop.permute.xlu0 %1466  ;;  %v1703_v43 = vmul.f32 %v1575_v26, %v1575_v26  ;;  %v1958_v26 = vrot.slane %v2723_v22, %v2785_v39 }
  0xe3   :  { %1646 = vrot.lane.b32.xlu0 %v1605_v63, %s2593_s0  ;;  %1648 = vrot.lane.b32.xlu1 %v1606_v45, %s2593_s0  ;;  %v1495_v61 = vsub.f32 %v1467_v56, %v2954_v16  ;;  %v1551_v41 = vpop.permute.xlu1 %1550  ;;  %v2985_v45 = vrot.slane %v1321_v42, %v2695_v14  ;;  %v2990_v55 = vrot.slane %v1323_v44, %v2695_v14 }
  0xe4   :  { %v1576_v54 = vsub.f32 %v1551_v41, %v2963_v2  ;;  %v2414_v41 = vld [vmem:[%s4066_s7] ss:$0 sm:$0xff] }
  0xe5   :  { %v1607_v5 = vmul.f32 %v1495_v61, %v1495_v61  ;;  %4090 = vst [vmem:[#allocation16_spill] sm:$0xff] %v2985_v45  ;;  %4091 = vst [vmem:[#allocation17_spill] sm:$0xff] %v2990_v55 }
  0xe6   :  { %v1471_v7 = vpop.permute.xlu0 %1470  ;;  %v1704_v56 = vmul.f32 %v1576_v54, %v1576_v54 }
  0xe7   :  { %1201 = vbcast.lane.b32.xlu0 %v2765_v34, 256  ;;  %1208 = vbcast.lane.b32.xlu1 %v2774_v36, 256  ;;  %v1496_v15 = vsub.f32 %v1471_v7, %v2963_v2  ;;  %v1916_v34 = vrot.slane %v2723_v22, %v2686_v12  ;;  %v1909_v36 = vrot.slane %v2723_v22, %v2695_v14  ;;  %v1555_v31 = vpop.permute.xlu1 %1554 }
  0xe8   :  { %v1577_v53 = vsub.f32 %v1555_v31, %v2975_v20 }
  0xe9   :  { %v1608_v19 = vmul.f32 %v1496_v15, %v1496_v15 }
  0xea   :  { %v1475_v50 = vpop.permute.xlu0 %1474 }
  0xeb   :  { %1742 = vrot.lane.b32.xlu0 %v1701_v60, %s2594_s1  ;;  %1744 = vrot.lane.b32.xlu1 %v1702_v62, %s2594_s1  ;;  %v1497_v28 = vsub.f32 %v1475_v50, %v2975_v20  ;;  %v1705_v60 = vmul.f32 %v1577_v53, %v1577_v53  ;;  %v1559_v62 = vpop.permute.xlu1 %1558  ;;  %v1951_v50 = vrot.slane %v2723_v22, %v2718_v21 }
  0xed   :  { %v1609_v63 = vmul.f32 %v1497_v28, %v1497_v28 }
  0xee   :  { %v1479_v49 = vpop.permute.xlu0 %1478 }
  0xef   :  { %1650 = vrot.lane.b32.xlu0 %v1607_v5, %s2593_s0  ;;  %1918 = vbcast.lane.b32.xlu1 %v1916_v34, 256  ;;  %v1498_v59 = vsub.f32 %v1479_v49, %v2985_v45  ;;  %v1937_v5 = vrot.slane %v2723_v22, %v2708_v18  ;;  %v1563_v15 = vpop.permute.xlu1 %1562 }
  0xf0   :  { %v1579_v34 = vsub.f32 %v1563_v15, %v2990_v55 }
  0xf1   :  { %v1610_v7 = vmul.f32 %v1498_v59, %v1498_v59 }
  0xf2   :  { %v1483_v57 = vpop.permute.xlu0 %1482  ;;  %v1707_v23 = vmul.f32 %v1579_v34, %v1579_v34 }
  0xf3   :  { %1911 = vbcast.lane.b32.xlu0 %v1909_v36, 256  ;;  %1652 = vrot.lane.b32.xlu1 %v1608_v19, %s2593_s0  ;;  %v1499_v61 = vsub.f32 %v1483_v57, %v2990_v55  ;;  %v1944_v36 = vrot.slane %v2723_v22, %v2769_v35 }
  0xf5   :  { %v1611_v11 = vmul.f32 %v1499_v61, %v1499_v61 }
  0xf6   :  { %v3014_v28 = vpop.permute.xlu0 %1117 }
  0xf7   :  { %1215 = vbcast.lane.b32.xlu0 %v2780_v37, 256  ;;  %1925 = vbcast.lane.b32.xlu1 %v1923_v33, 256  ;;  %v1930_v37 = vrot.slane %v2723_v22, %v2755_v32 }
  0xfa   :  { %v3016_v33 = vpop.permute.xlu0 %1131 }
  0xfb   :  { %1746 = vrot.lane.b32.xlu0 %v1703_v43, %s2594_s1  ;;  %1654 = vrot.lane.b32.xlu1 %v1609_v63, %s2593_s0 }
  0xfe   :  { %v3023_v54 = vpop.permute.xlu0 %1159 }
  0xff   :  { %1222 = vbcast.lane.b32.xlu0 %v2790_v40, 256  ;;  %1932 = vbcast.lane.b32.xlu1 %v1930_v37, 256  ;;  %v1578_v40 = vsub.f32 %v1559_v62, %v2985_v45 }
 0x101   :  { %v1706_v19 = vmul.f32 %v1578_v40, %v1578_v40 }
 0x103   :  { %1748 = vrot.lane.b32.xlu0 %v1704_v56, %s2594_s1  ;;  %1750 = vrot.lane.b32.xlu1 %v1705_v60, %s2594_s1  ;;  %v3030_v60 = vpop.permute.xlu0 %1173 }
 0x104   :  { %4092 = vst [vmem:[#allocation18_spill] sm:$0xff] %v3030_v60 }
 0x107   :  { %1656 = vrot.lane.b32.xlu0 %v1610_v7, %s2593_s0  ;;  %1658 = vrot.lane.b32.xlu1 %v1611_v11, %s2593_s0 }
 0x10b   :  { %1939 = vbcast.lane.b32.xlu0 %v1937_v5, 256  ;;  %1946 = vbcast.lane.b32.xlu1 %v1944_v36, 256 }
 0x10f   :  { %1752 = vrot.lane.b32.xlu0 %v1706_v19, %s2594_s1  ;;  %1754 = vrot.lane.b32.xlu1 %v1707_v23, %s2594_s1 }
 0x113   :  { %1953 = vbcast.lane.b32.xlu0 %v1951_v50, 256  ;;  %1960 = vbcast.lane.b32.xlu1 %v1958_v26, 256 }
 0x14a   :  { %v138_v42 = vpop.f32.mrf.mxu0 }
 0x14b   :  { %v139_v43 = vadd.f32 %v2414_v41, %v138_v42 }
 0x14c   :  { %v2434_v63 = vpop.f32.mrf.mxu0 }
 0x14d   :  { %145 = vst.msk [vmem:[#allocation2] sm:$0xff] %vm100_vm2, %v139_v43  ;;  %v147_v44 = vsub.f32 %v139_v43, %v2809_v48 }
 0x14e   :  { %v141_v22 = vpop.f32.mrf.mxu0 }
 0x14f   :  { %v142_v49 = vadd.f32 %v2414_v41, %v141_v22  ;;  %v159_v31 = vmul.f32 %v2889_v6, %v147_v44  ;;  %v3034_v6 = vpop.permute.xlu0 %1628 }
 0x150   :  { %v2435_v53 = vpop.f32.mrf.mxu0 }
 0x151   :  { %146 = vst.msk [vmem:[#allocation2 + $0x8] sm:$0xff] %vm100_vm2, %v142_v49  ;;  %v148_v37 = vsub.f32 %v142_v49, %v2817_v51  ;;  %v175_v56 = vpack.c.bf16 %v142_v49, %v139_v43  ;;  %v161_v59 = vmul.f32 %v159_v31, %v147_v44 }
 0x153   :  { %2441 = vmatmul.mubr.msk.bf16.vlgmr.msra.gmra.mxu1 %vm100_vm2, %v175_v56  ;;  %v160_v57 = vmul.f32 %v2831_v0, %v148_v37  ;;  %v163_v61 = vsel %vm100_vm2, %v161_v59, 0.0  ;;  %v3036_v11 = vpop.permute.xlu0 %1632  ;;  %v3080_v56 = vpop.permute.xlu1 %1124 }
 0x155   :  { %v162_v48 = vmul.f32 %v160_v57, %v148_v37 }
 0x157   :  { %v164_v62 = vsel %vm100_vm2, %v162_v48, 0.0  ;;  %v3038_v51 = vpop.permute.xlu0 %1726 }
 0x158   :  { %v165_v7 = vadd.f32 %v164_v62, %v163_v61  ;;  %4093 = vst [vmem:[#allocation19_spill] sm:$0xff] %v3038_v51  ;;  %v3082_v61 = vpop.permute.xlu1 %1138 }
 0x15a   :  { %166 = vadd.xlane.f32.xlu0 %v165_v7 }
 0x15b   :  { %v3040_v5 = vpop.permute.xlu0 %1634 }
 0x15c   :  { %4094 = vst [vmem:[#allocation20_spill] sm:$0xff] %v3040_v5  ;;  %v3084_v8 = vpop.permute.xlu1 %1145 }
 0x15f   :  { %v3042_v15 = vpop.permute.xlu0 %1730 }
 0x160   :  { %4095 = vst [vmem:[#allocation21_spill] sm:$0xff] %v3042_v15  ;;  %v3086_v55 = vpop.permute.xlu1 %1152 }
 0x163   :  { %v3044_v0 = vpop.permute.xlu0 %1638 }
 0x164   :  { %4096 = vst [vmem:[#allocation22_spill] sm:$0xff] %v3044_v0 }
 0x167   :  { %v3046_v40 = vpop.permute.xlu0 %1734 }
 0x168   :  { %4097 = vst [vmem:[#allocation23_spill] sm:$0xff] %v3046_v40 }
 0x16b   :  { %v3048_v34 = vpop.permute.xlu0 %1642 }
 0x16c   :  { %4098 = vst [vmem:[#allocation24_spill] sm:$0xff] %v3048_v34 }
 0x16f   :  { %v3050_v36 = vpop.permute.xlu0 %1187 }
 0x170   :  { %4099 = vst [vmem:[#allocation25_spill] sm:$0xff] %v3050_v36 }
 0x173   :  { %v3052_v19 = vpop.permute.xlu0 %1738 }
 0x174   :  { %4100 = vst [vmem:[#allocation26_spill] sm:$0xff] %v3052_v19 }
 0x177   :  { %v3054_v23 = vpop.permute.xlu0 %1646 }
 0x178   :  { %4101 = vst [vmem:[#allocation27_spill] sm:$0xff] %v3054_v23 }
 0x17b   :  { %v3056_v50 = vpop.permute.xlu0 %1201 }
 0x17c   :  { %4102 = vst [vmem:[#allocation28_spill] sm:$0xff] %v3056_v50 }
 0x17f   :  { %v3058_v26 = vpop.permute.xlu0 %1742 }
 0x180   :  { %4103 = vst [vmem:[#allocation29_spill] sm:$0xff] %v3058_v26 }
 0x183   :  { %v3060_v41 = vpop.permute.xlu0 %1650 }
 0x184   :  { %4104 = vst [vmem:[#allocation30_spill] sm:$0xff] %v3060_v41 }
 0x187   :  { %v3062_v42 = vpop.permute.xlu0 %1911 }
 0x188   :  { %4105 = vst [vmem:[#allocation31_spill] sm:$0xff] %v3062_v42 }
 0x18b   :  { %v3064_v43 = vpop.permute.xlu0 %1215 }
 0x18c   :  { %4106 = vst [vmem:[#allocation32_spill] sm:$0xff] %v3064_v43 }
 0x18f   :  { %v3066_v63 = vpop.permute.xlu0 %1746 }
 0x190   :  { %4107 = vst [vmem:[#allocation33_spill] sm:$0xff] %v3066_v63 }
 0x193   :  { %v3068_v44 = vpop.permute.xlu0 %1222 }
 0x194   :  { %4108 = vst [vmem:[#allocation34_spill] sm:$0xff] %v3068_v44 }
 0x197   :  { %v3070_v22 = vpop.permute.xlu0 %1748 }
 0x198   :  { %4109 = vst [vmem:[#allocation35_spill] sm:$0xff] %v3070_v22  ;;  %v3088_v22 = vpop.permute.xlu1 %1166 }
 0x19b   :  { %v3072_v49 = vpop.permute.xlu0 %1656 }
 0x19c   :  { %4110 = vst [vmem:[#allocation36_spill] sm:$0xff] %v3072_v49 }
 0x19f   :  { %v3074_v31 = vpop.permute.xlu0 %1939 }
 0x1a0   :  { %4111 = vst [vmem:[#allocation37_spill] sm:$0xff] %v3074_v31 }
 0x1a3   :  { %v3076_v53 = vpop.permute.xlu0 %1752 }
 0x1a4   :  { %4112 = vst [vmem:[#allocation38_spill] sm:$0xff] %v3076_v53  ;;  %v3090_v53 = vpop.permute.xlu1 %1180 }
 0x1a5   :  { %4114 = vst [vmem:[#allocation40_spill] sm:$0xff] %v3090_v53 }
 0x1a7   :  { %v3078_v37 = vpop.permute.xlu0 %1953 }
 0x1a8   :  { %4113 = vst [vmem:[#allocation39_spill] sm:$0xff] %v3078_v37  ;;  %v3092_v37 = vpop.permute.xlu1 %1630 }
 0x1ac   :  { %v3094_v31 = vpop.permute.xlu1 %1724 }
 0x1e3   :  { %v167_v57 = vpop.xlane.xlu0 %166 }
 0x1e4   :  { %v168_v59 = vrot.slane %v167_v57, 4 }
 0x1e6   :  { %v169_v48 = vadd.f32 %v168_v59, %v167_v57  ;;  %v2418_v57 = vld [vmem:[%s4068_s9] ss:$0 sm:$0xff]  ;;  %v3099_v59 = vpop.permute.xlu1 %1728 }
 0x1e8   :  { %v170_v62 = vrot.slane %v169_v48, 2 }
 0x1ea   :  { %v171_v7 = vadd.f32 %v170_v62, %v169_v48  ;;  %v3107_v42 = vpop.permute.xlu1 %1636 }
 0x1ec   :  { %v172_v4 = vrot.slane %v171_v7, 1 }
 0x1ee   :  { %v173_v44 = vadd.f32 %v172_v4, %v171_v7 }
 0x1f0   :  { %2444 = vpush %v173_v44 }
 0x213   :  { %v236_v48 = vpop.f32.mrf.mxu1 }
 0x214   :  { %v3101_v62 = vadd.f32 %v2418_v57, %v236_v48 }
 0x215   :  { %v2442_v4 = vpop.f32.mrf.mxu1 }
 0x216   :  { %v334_v44 = vrot.slane %v3101_v62, %v2686_v12  ;;  %v327_v7 = vrot.slane %v3101_v62, %v2695_v14  ;;  %v362_v2 = vrot.slane %v3101_v62, %v2769_v35  ;;  %v341_v48 = vrot.slane %v3101_v62, %v2704_v17  ;;  %v3113_v4 = vpop.permute.xlu1 %1732 }
 0x217   :  { %v239_v20 = vpop.f32.mrf.mxu1  ;;  %v376_v63 = vrot.slane %v3101_v62, %v2785_v39  ;;  %v348_v49 = vrot.slane %v3101_v62, %v2755_v32  ;;  %v369_v19 = vrot.slane %v3101_v62, %v2718_v21  ;;  %v247_v45 = vsub.f32 %v3101_v62, %v2692_v13 }
 0x218   :  { %336 = vbcast.lane.b32.xlu1 %v334_v44, 256  ;;  %329 = vbcast.lane.b32.xlu0 %v327_v7, 256 }
 0x219   :  { %v2443_v50 = vpop.f32.mrf.mxu1  ;;  %v3137_v38 = vmul.f32 %v247_v45, %v247_v45 }
 0x21a   :  { %v355_v50 = vrot.slane %v3101_v62, %v2708_v18  ;;  %v3121_v26 = vpop.permute.xlu1 %1640 }
 0x21c   :  { %364 = vbcast.lane.b32.xlu1 %v362_v2, 256  ;;  %343 = vbcast.lane.b32.xlu0 %v341_v48, 256 }
 0x21e   :  { %v3125_v41 = vpop.permute.xlu1 %1736 }
 0x220   :  { %378 = vbcast.lane.b32.xlu1 %v376_v63, 256  ;;  %350 = vbcast.lane.b32.xlu0 %v348_v49, 256 }
 0x222   :  { %v3127_v23 = vpop.permute.xlu1 %1644 }
 0x223   :  { %4115 = vst [vmem:[#allocation41_spill] sm:$0xff] %v3127_v23 }
 0x224   :  { %638 = vbcast.lane.b32.xlu1 %v334_v44, 264  ;;  %357 = vbcast.lane.b32.xlu0 %v355_v50, 256 }
 0x226   :  { %v3129_v34 = vpop.permute.xlu1 %1194 }
 0x227   :  { %4116 = vst [vmem:[#allocation42_spill] sm:$0xff] %v3129_v34 }
 0x228   :  { %646 = vbcast.lane.b32.xlu1 %v348_v49, 264  ;;  %371 = vbcast.lane.b32.xlu0 %v369_v19, 256 }
 0x22a   :  { %v3131_v43 = vpop.permute.xlu1 %1740 }
 0x22b   :  { %4117 = vst [vmem:[#allocation43_spill] sm:$0xff] %v3131_v43 }
 0x22c   :  { %654 = vbcast.lane.b32.xlu1 %v362_v2, 264  ;;  %634 = vbcast.lane.b32.xlu0 %v327_v7, 264 }
 0x22e   :  { %v3135_v36 = vpop.permute.xlu1 %1648 }
 0x22f   :  { %4118 = vst [vmem:[#allocation44_spill] sm:$0xff] %v3135_v36 }
 0x230   :  { %662 = vbcast.lane.b32.xlu1 %v376_v63, 264  ;;  %642 = vbcast.lane.b32.xlu0 %v341_v48, 264 }
 0x234   :  { %718 = vbcast.lane.b32.xlu1 %v334_v44, 272  ;;  %650 = vbcast.lane.b32.xlu0 %v355_v50, 264  ;;  %v3141_v44 = vpop.permute.xlu1 %1208 }
 0x235   :  { %4119 = vst [vmem:[#allocation45_spill] sm:$0xff] %v3141_v44 }
 0x238   :  { %722 = vbcast.lane.b32.xlu1 %v341_v48, 272  ;;  %658 = vbcast.lane.b32.xlu0 %v369_v19, 264  ;;  %v3143_v48 = vadd.f32 %v2418_v57, %v239_v20  ;;  %v3151_v45 = vpop.permute.xlu1 %1744 }
 0x239   :  { %4120 = vst [vmem:[#allocation46_spill] sm:$0xff] %v3151_v45 }
 0x23a   :  { %v390_v13 = vrot.slane %v3143_v48, %v2686_v12  ;;  %v397_v20 = vrot.slane %v3143_v48, %v2704_v17  ;;  %v411_v57 = vrot.slane %v3143_v48, %v2708_v18 }
 0x23c   :  { %730 = vbcast.lane.b32.xlu1 %v355_v50, 272  ;;  %714 = vbcast.lane.b32.xlu0 %v327_v7, 272  ;;  %v432_v7 = vrot.slane %v3143_v48, %v2785_v39  ;;  %v425_v50 = vrot.slane %v3143_v48, %v2718_v21 }
 0x240   :  { %738 = vbcast.lane.b32.xlu1 %v369_v19, 272  ;;  %726 = vbcast.lane.b32.xlu0 %v348_v49, 272  ;;  %v383_v19 = vrot.slane %v3143_v48, %v2695_v14  ;;  %v3157_v49 = vpop.permute.xlu1 %1918 }
 0x241   :  { %4121 = vst [vmem:[#allocation47_spill] sm:$0xff] %v3157_v49 }
 0x244   :  { %253 = vrot.lane.b32.xlu1 %v3137_v38, %s2593_s0  ;;  %734 = vbcast.lane.b32.xlu0 %v362_v2, 272  ;;  %v404_v2 = vrot.slane %v3143_v48, %v2755_v32  ;;  %v3167_v44 = vpop.permute.xlu1 %1652 }
 0x245   :  { %4122 = vst [vmem:[#allocation48_spill] sm:$0xff] %v3167_v44 }
 0x248   :  { %261 = vrot.lane.b32.xlu1 %v3137_v38, %s2594_s1  ;;  %742 = vbcast.lane.b32.xlu0 %v376_v63, 272  ;;  %v418_v63 = vrot.slane %v3143_v48, %v2769_v35  ;;  %v3169_v49 = vpop.permute.xlu1 %1925 }
 0x249   :  { %4123 = vst [vmem:[#allocation49_spill] sm:$0xff] %v3169_v49 }
 0x24c   :  { %392 = vbcast.lane.b32.xlu1 %v390_v13, 256  ;;  %385 = vbcast.lane.b32.xlu0 %v383_v19, 256  ;;  %v3171_v45 = vpop.permute.xlu1 %1654 }
 0x24d   :  { %4124 = vst [vmem:[#allocation50_spill] sm:$0xff] %v3171_v45 }
 0x250   :  { %406 = vbcast.lane.b32.xlu1 %v404_v2, 256  ;;  %399 = vbcast.lane.b32.xlu0 %v397_v20, 256  ;;  %v3173_v39 = vpop.permute.xlu1 %1932 }
 0x251   :  { %4125 = vst [vmem:[#allocation51_spill] sm:$0xff] %v3173_v39 }
 0x254   :  { %420 = vbcast.lane.b32.xlu1 %v418_v63, 256  ;;  %413 = vbcast.lane.b32.xlu0 %v411_v57, 256  ;;  %v3175_v36 = vpop.permute.xlu1 %1750 }
 0x255   :  { %4126 = vst [vmem:[#allocation52_spill] sm:$0xff] %v3175_v36 }
 0x258   :  { %434 = vbcast.lane.b32.xlu1 %v432_v7, 256  ;;  %427 = vbcast.lane.b32.xlu0 %v425_v50, 256  ;;  %v3177_v44 = vpop.permute.xlu1 %1658 }
 0x259   :  { %4127 = vst [vmem:[#allocation53_spill] sm:$0xff] %v3177_v44 }
 0x25c   :  { %670 = vbcast.lane.b32.xlu1 %v390_v13, 264  ;;  %666 = vbcast.lane.b32.xlu0 %v383_v19, 264 }
 0x260   :  { %746 = vbcast.lane.b32.xlu1 %v383_v19, 272  ;;  %674 = vbcast.lane.b32.xlu0 %v397_v20, 264  ;;  %v248_v19 = vsub.f32 %v3143_v48, %v2739_v27 }
 0x264   :  { %750 = vbcast.lane.b32.xlu1 %v390_v13, 272  ;;  %678 = vbcast.lane.b32.xlu0 %v404_v2, 264  ;;  %v3181_v13 = vmul.f32 %v248_v19, %v248_v19 }
 0x268   :  { %754 = vbcast.lane.b32.xlu1 %v397_v20, 272  ;;  %682 = vbcast.lane.b32.xlu0 %v411_v57, 264  ;;  %v3183_v20 = vpop.permute.xlu1 %1946 }
 0x269   :  { %4128 = vst [vmem:[#allocation54_spill] sm:$0xff] %v3183_v20 }
 0x26c   :  { %758 = vbcast.lane.b32.xlu1 %v404_v2, 272  ;;  %686 = vbcast.lane.b32.xlu0 %v418_v63, 264  ;;  %v445_v2 = vrot.slane %v3101_v62, %v2804_v46 }
 0x26e   :  { %v461_v19 = vrot.slane %v445_v2, %v2804_v46 }
 0x270   :  { %762 = vbcast.lane.b32.xlu1 %v411_v57, 272  ;;  %690 = vbcast.lane.b32.xlu0 %v425_v50, 264  ;;  %v453_v57 = vcombine.high %v445_v2, %v445_v2  ;;  %v539_v39 = vrot.slane %v461_v19, %v2695_v14  ;;  %v483_v45 = vcombine.high %v461_v19, %v461_v19 }
 0x272   :  { %v547_v2 = vrot.slane %v483_v45, %v2695_v14 }
 0x274   :  { %766 = vbcast.lane.b32.xlu1 %v418_v63, 272  ;;  %694 = vbcast.lane.b32.xlu0 %v432_v7, 264  ;;  %v438_v63 = vcombine.high %v3101_v62, %v3101_v62 }
 0x276   :  { %v452_v27 = vrot.slane %v438_v63, %v2804_v46 }
 0x278   :  { %770 = vbcast.lane.b32.xlu1 %v425_v50, 272  ;;  %774 = vbcast.lane.b32.xlu0 %v432_v7, 272  ;;  %v3194_v7 = vpop.permute.xlu1 %1754  ;;  %v475_v50 = vrot.slane %v453_v57, %v2804_v46  ;;  %v454_v44 = vcombine.high %v452_v27, %v452_v27 }
 0x279   :  { %4129 = vst [vmem:[#allocation55_spill] sm:$0xff] %v3194_v7 }
 0x27a   :  { %v543_v36 = vrot.slane %v475_v50, %v2695_v14  ;;  %v482_v62 = vrot.slane %v454_v44, %v2804_v46 }
 0x27c   :  { %255 = vrot.lane.b32.xlu1 %v3181_v13, %s2593_s0  ;;  %v3198_v20 = vpop.permute.xlu1 %1960  ;;  %v3208_v57 = vrot.slane %v482_v62, %v2695_v14  ;;  %v486_v7 = vcombine.high %v482_v62, %v482_v62 }
 0x27d   :  { %4130 = vst [vmem:[#allocation56_spill] sm:$0xff] %v3198_v20  ;;  %v485_v20 = vcombine.high %v475_v50, %v475_v50 }
 0x27e   :  { %v3217_v19 = vrot.slane %v486_v7, %v2695_v14 }
 0x280   :  { %263 = vrot.lane.b32.xlu1 %v3181_v13, %s2594_s1 }
 0x28a   :  { %v337_v49 = vpop.permute.xlu1 %336  ;;  %v330_v43 = vpop.permute.xlu0 %329 }
 0x28b   :  { %v3203_v34 = vsub.f32 %v337_v49, %v543_v36  ;;  %v3205_v63 = vsub.f32 %v330_v43, %v539_v39  ;;  %v551_v43 = vrot.slane %v485_v20, %v2695_v14  ;;  %v468_v49 = vrot.slane %v452_v27, %v2804_v46 }
 0x28d   :  { %4131 = vst [vmem:[#allocation57_spill] sm:$0xff] %v3203_v34  ;;  %4132 = vst [vmem:[#allocation58_spill] sm:$0xff] %v3205_v63  ;;  %v555_v62 = vrot.slane %v468_v49, %v2695_v14 }
 0x28e   :  { %v365_v16 = vpop.permute.xlu1 %364  ;;  %v344_v23 = vpop.permute.xlu0 %343 }
 0x28f   :  { %v3212_v40 = vsub.f32 %v365_v16, %v3208_v57  ;;  %v3214_v44 = vsub.f32 %v344_v23, %v547_v2  ;;  %v484_v16 = vcombine.high %v468_v49, %v468_v49 }
 0x291   :  { %4133 = vst [vmem:[#allocation59_spill] sm:$0xff] %v3212_v40  ;;  %4134 = vst [vmem:[#allocation60_spill] sm:$0xff] %v3214_v44  ;;  %v563_v20 = vrot.slane %v484_v16, %v2695_v14 }
 0x292   :  { %v379_v63 = vpop.permute.xlu1 %378  ;;  %v351_v34 = vpop.permute.xlu0 %350 }
 0x293   :  { %v3222_v45 = vsub.f32 %v379_v63, %v3217_v19  ;;  %v3224_v50 = vsub.f32 %v351_v34, %v551_v43 }
 0x295   :  { %4135 = vst [vmem:[#allocation61_spill] sm:$0xff] %v3222_v45  ;;  %4136 = vst [vmem:[#allocation62_spill] sm:$0xff] %v3224_v50 }
 0x296   :  { %v639_v40 = vpop.permute.xlu1 %638  ;;  %v358_v23 = vpop.permute.xlu0 %357 }
 0x297   :  { %v697_v44 = vsub.f32 %v639_v40, %v543_v36  ;;  %v3227_v0 = vsub.f32 %v358_v23, %v555_v62 }
 0x299   :  { %4137 = vst [vmem:[#allocation63_spill] sm:$0xff] %v3227_v0  ;;  %v809_v7 = vmul.f32 %v697_v44, %v697_v44 }
 0x29a   :  { %v647_v15 = vpop.permute.xlu1 %646  ;;  %v372_v27 = vpop.permute.xlu0 %371 }
 0x29b   :  { %v3230_v51 = vsub.f32 %v372_v27, %v563_v20  ;;  %842 = vrot.lane.b32.xlu0 %v809_v7, %s2593_s0 }
 0x29d   :  { %4138 = vst [vmem:[#allocation64_spill] sm:$0xff] %v3230_v51 }
 0x29e   :  { %v655_v63 = vpop.permute.xlu1 %654  ;;  %v635_v34 = vpop.permute.xlu0 %634 }
 0x29f   :  { %v696_v45 = vsub.f32 %v635_v34, %v539_v39 }
 0x2a1   :  { %v808_v50 = vmul.f32 %v696_v45, %v696_v45 }
 0x2a2   :  { %v3233_v60 = vpop.permute.xlu1 %662  ;;  %v643_v49 = vpop.permute.xlu0 %642 }
 0x2a3   :  { %v698_v58 = vsub.f32 %v643_v49, %v547_v2  ;;  %840 = vrot.lane.b32.xlu1 %v808_v50, %s2593_s0  ;;  %v699_v50 = vsub.f32 %v647_v15, %v551_v43 }
 0x2a5   :  { %v810_v40 = vmul.f32 %v698_v58, %v698_v58  ;;  %v494_v58 = vrot.slane %v3143_v48, %v2804_v46 }
 0x2a6   :  { %v719_v44 = vpop.permute.xlu1 %718  ;;  %v651_v23 = vpop.permute.xlu0 %650 }
 0x2a7   :  { %v777_v16 = vsub.f32 %v719_v44, %v543_v36  ;;  %844 = vrot.lane.b32.xlu0 %v810_v40, %s2593_s0  ;;  %v700_v34 = vsub.f32 %v651_v23, %v555_v62 }
 0x2a9   :  { %v905_v27 = vmul.f32 %v777_v16, %v777_v16  ;;  %v812_v36 = vmul.f32 %v700_v34, %v700_v34 }
 0x2aa   :  { %v723_v51 = vpop.permute.xlu1 %722  ;;  %v659_v0 = vpop.permute.xlu0 %658 }
 0x2ab   :  { %v778_v7 = vsub.f32 %v723_v51, %v547_v2  ;;  %938 = vrot.lane.b32.xlu0 %v905_v27, %s2594_s1  ;;  %v502_v51 = vcombine.high %v494_v58, %v494_v58  ;;  %v487_v2 = vcombine.high %v3143_v48, %v3143_v48 }
 0x2ad   :  { %v906_v45 = vmul.f32 %v778_v7, %v778_v7  ;;  %v524_v15 = vrot.slane %v502_v51, %v2804_v46 }
 0x2ae   :  { %v731_v53 = vpop.permute.xlu1 %730  ;;  %v715_v25 = vpop.permute.xlu0 %714 }
 0x2af   :  { %v776_v5 = vsub.f32 %v715_v25, %v539_v39  ;;  %940 = vrot.lane.b32.xlu0 %v906_v45, %s2594_s1  ;;  %v780_v49 = vsub.f32 %v731_v53, %v555_v62  ;;  %v811_v39 = vmul.f32 %v699_v50, %v699_v50  ;;  %v702_v25 = vsub.f32 %v659_v0, %v563_v20 }
 0x2b0   :  { %v510_v53 = vrot.slane %v494_v58, %v2804_v46  ;;  %v501_v62 = vrot.slane %v487_v2, %v2804_v46  ;;  %v534_v58 = vcombine.high %v524_v15, %v524_v15 }
 0x2b1   :  { %v904_v40 = vmul.f32 %v776_v5, %v776_v5  ;;  %v908_v23 = vmul.f32 %v780_v49, %v780_v49  ;;  %v701_v5 = vsub.f32 %v655_v63, %v3208_v57  ;;  %v814_v34 = vmul.f32 %v702_v25, %v702_v25 }
 0x2b2   :  { %v739_v44 = vpop.permute.xlu1 %738  ;;  %v727_v16 = vpop.permute.xlu0 %726  ;;  %v575_v63 = vrot.slane %v524_v15, %v2695_v14 }
 0x2b3   :  { %848 = vrot.lane.b32.xlu0 %v812_v36, %s2593_s0  ;;  %936 = vrot.lane.b32.xlu1 %v904_v40, %s2594_s1  ;;  %v779_v27 = vsub.f32 %v727_v16, %v551_v43  ;;  %v782_v48 = vsub.f32 %v739_v44, %v563_v20  ;;  %v571_v40 = vrot.slane %v510_v53, %v2695_v14 }
 0x2b4   :  { %v532_v16 = vcombine.high %v510_v53, %v510_v53  ;;  %v813_v51 = vmul.f32 %v701_v5, %v701_v5  ;;  %v503_v44 = vcombine.high %v501_v62, %v501_v62  ;;  %v703_v5 = vsub.f32 %v3233_v60, %v3217_v19 }
 0x2b5   :  { %v907_v50 = vmul.f32 %v779_v27, %v779_v27  ;;  %v910_v2 = vmul.f32 %v782_v48, %v782_v48  ;;  %v583_v27 = vrot.slane %v534_v58, %v2695_v14 }
 0x2b6   :  { %v254_v7 = vpop.permute.xlu1 %253  ;;  %v735_v45 = vpop.permute.xlu0 %734 }
 0x2b7   :  { %944 = vrot.lane.b32.xlu0 %v908_v23, %s2594_s1  ;;  %846 = vrot.lane.b32.xlu1 %v811_v39, %s2593_s0  ;;  %v259_v0 = vadd.f32 %v254_v7, %v3137_v38  ;;  %v781_v20 = vsub.f32 %v735_v45, %v3208_v57  ;;  %v517_v7 = vrot.slane %v501_v62, %v2804_v46 }
 0x2b8   :  { %v579_v57 = vrot.slane %v532_v16, %v2695_v14  ;;  %v531_v45 = vrot.slane %v503_v44, %v2804_v46  ;;  %v815_v62 = vmul.f32 %v703_v5, %v703_v5 }
 0x2b9   :  { %v909_v15 = vmul.f32 %v781_v20, %v781_v20 }
 0x2ba   :  { %v262_v43 = vpop.permute.xlu1 %261  ;;  %v743_v36 = vpop.permute.xlu0 %742  ;;  %v591_v60 = vrot.slane %v531_v45, %v2695_v14 }
 0x2bb   :  { %v3252_v49 = vadd.f32 %v262_v43, %v259_v0  ;;  %852 = vrot.lane.b32.xlu0 %v814_v34, %s2593_s0  ;;  %942 = vrot.lane.b32.xlu1 %v907_v50, %s2594_s1  ;;  %v587_v0 = vrot.slane %v517_v7, %v2695_v14  ;;  %v533_v43 = vcombine.high %v517_v7, %v517_v7 }
 0x2bc   :  { %v783_v58 = vsub.f32 %v743_v36, %v3217_v19 }
 0x2bd   :  { %v595_v7 = vrot.slane %v533_v43, %v2695_v14  ;;  %vm286_vm8 = vcmp.eq.f32.partialorder %v3252_v49, inf  ;;  %vm288_vm10 = vcmp.eq.f32.partialorder %v3252_v49, 0.0 }
 0x2be   :  { %v393_v38 = vpop.permute.xlu1 %392  ;;  %v386_v39 = vpop.permute.xlu0 %385 }
 0x2bf   :  { %v3259_v25 = vsub.f32 %v393_v38, %v575_v63  ;;  %v3261_v23 = vsub.f32 %v386_v39, %v571_v40  ;;  %948 = vrot.lane.b32.xlu0 %v910_v2, %s2594_s1  ;;  %850 = vrot.lane.b32.xlu1 %v813_v51, %s2593_s0  ;;  %v535_v51 = vcombine.high %v531_v45, %v531_v45 }
 0x2c0   :  { %v911_v38 = vmul.f32 %v783_v58, %v783_v58 }
 0x2c1   :  { %v3285_v39 = vrot.slane %v535_v51, %v2695_v14 }
 0x2c2   :  { %v407_v53 = vpop.permute.xlu1 %406  ;;  %v400_v34 = vpop.permute.xlu0 %399 }
 0x2c3   :  { %v3271_v48 = vsub.f32 %v407_v53, %v583_v27  ;;  %v3273_v50 = vsub.f32 %v400_v34, %v579_v57  ;;  %946 = vrot.lane.b32.xlu1 %v909_v15, %s2594_s1 }
 0x2c6   :  { %v421_v16 = vpop.permute.xlu1 %420  ;;  %v414_v2 = vpop.permute.xlu0 %413 }
 0x2c7   :  { %v3279_v20 = vsub.f32 %v421_v16, %v591_v60  ;;  %v3281_v44 = vsub.f32 %v414_v2, %v587_v0  ;;  %854 = vrot.lane.b32.xlu1 %v815_v62, %s2593_s0 }
 0x2c9   :  { %4139 = vst [vmem:[#allocation65_spill] sm:$0xff] %v3279_v20  ;;  %4140 = vst [vmem:[#allocation66_spill] sm:$0xff] %v3281_v44 }
 0x2ca   :  { %v435_v5 = vpop.permute.xlu1 %434  ;;  %v428_v15 = vpop.permute.xlu0 %427 }
 0x2cb   :  { %v3289_v19 = vsub.f32 %v435_v5, %v3285_v39  ;;  %v3291_v36 = vsub.f32 %v428_v15, %v595_v7  ;;  %950 = vrot.lane.b32.xlu1 %v911_v38, %s2594_s1 }
 0x2cd   :  { %4141 = vst [vmem:[#allocation67_spill] sm:$0xff] %v3289_v19  ;;  %4142 = vst [vmem:[#allocation68_spill] sm:$0xff] %v3291_v36 }
 0x2ce   :  { %v671_v45 = vpop.permute.xlu1 %670  ;;  %v667_v53 = vpop.permute.xlu0 %666 }
 0x2cf   :  { %v705_v34 = vsub.f32 %v671_v45, %v575_v63  ;;  %v704_v16 = vsub.f32 %v667_v53, %v571_v40 }
 0x2d1   :  { %v817_v62 = vmul.f32 %v705_v34, %v705_v34  ;;  %v816_v58 = vmul.f32 %v704_v16, %v704_v16 }
 0x2d2   :  { %v747_v2 = vpop.permute.xlu1 %746  ;;  %v675_v51 = vpop.permute.xlu0 %674 }
 0x2d3   :  { %v784_v20 = vsub.f32 %v747_v2, %v571_v40  ;;  %858 = vrot.lane.b32.xlu1 %v817_v62, %s2593_s0  ;;  %856 = vrot.lane.b32.xlu0 %v816_v58, %s2593_s0  ;;  %v706_v5 = vsub.f32 %v675_v51, %v579_v57 }
 0x2d5   :  { %v912_v43 = vmul.f32 %v784_v20, %v784_v20  ;;  %v818_v38 = vmul.f32 %v706_v5, %v706_v5 }
 0x2d6   :  { %v751_v19 = vpop.permute.xlu1 %750  ;;  %v679_v15 = vpop.permute.xlu0 %678 }
 0x2d7   :  { %v785_v36 = vsub.f32 %v751_v19, %v575_v63  ;;  %952 = vrot.lane.b32.xlu0 %v912_v43, %s2594_s1  ;;  %v707_v45 = vsub.f32 %v679_v15, %v583_v27 }
 0x2d9   :  { %v913_v44 = vmul.f32 %v785_v36, %v785_v36  ;;  %v819_v40 = vmul.f32 %v707_v45, %v707_v45 }
 0x2da   :  { %v755_v53 = vpop.permute.xlu1 %754  ;;  %v683_v34 = vpop.permute.xlu0 %682 }
 0x2db   :  { %v786_v16 = vsub.f32 %v755_v53, %v579_v57  ;;  %954 = vrot.lane.b32.xlu1 %v913_v44, %s2594_s1  ;;  %860 = vrot.lane.b32.xlu0 %v818_v38, %s2593_s0  ;;  %v708_v58 = vsub.f32 %v683_v34, %v587_v0 }
 0x2dd   :  { %v914_v62 = vmul.f32 %v786_v16, %v786_v16  ;;  %v820_v63 = vmul.f32 %v708_v58, %v708_v58 }
 0x2de   :  { %v759_v20 = vpop.permute.xlu1 %758  ;;  %v687_v2 = vpop.permute.xlu0 %686 }
 0x2df   :  { %v787_v51 = vsub.f32 %v759_v20, %v583_v27  ;;  %956 = vrot.lane.b32.xlu0 %v914_v62, %s2594_s1  ;;  %862 = vrot.lane.b32.xlu1 %v819_v40, %s2593_s0  ;;  %v709_v36 = vsub.f32 %v687_v2, %v591_v60 }
 0x2e1   :  { %v915_v19 = vmul.f32 %v787_v51, %v787_v51  ;;  %v821_v44 = vmul.f32 %v709_v36, %v709_v36 }
 0x2e2   :  { %v763_v43 = vpop.permute.xlu1 %762  ;;  %v691_v5 = vpop.permute.xlu0 %690 }
 0x2e3   :  { %v788_v57 = vsub.f32 %v763_v43, %v587_v0  ;;  %958 = vrot.lane.b32.xlu1 %v915_v19, %s2594_s1  ;;  %864 = vrot.lane.b32.xlu0 %v820_v63, %s2593_s0  ;;  %v710_v38 = vsub.f32 %v691_v5, %v595_v7  ;;  %v1408_v63 = vsub.f32 %v3084_v8, %v2859_v29 }
 0x2e5   :  { %v916_v15 = vmul.f32 %v788_v57, %v788_v57  ;;  %v822_v34 = vmul.f32 %v710_v38, %v710_v38  ;;  %v1584_v57 = vmul.f32 %v1408_v63, %v1408_v63  ;;  %v2595_v63 = vmov 1.0  }
 0x2e6   :  { %v767_v45 = vpop.permute.xlu1 %766  ;;  %v695_v53 = vpop.permute.xlu0 %694 }
 0x2e7   :  { %v789_v27 = vsub.f32 %v767_v45, %v591_v60  ;;  %960 = vrot.lane.b32.xlu1 %v916_v15, %s2594_s1  ;;  %866 = vrot.lane.b32.xlu0 %v821_v44, %s2593_s0  ;;  %v711_v40 = vsub.f32 %v695_v53, %v3285_v39  ;;  %v3314_v60 = vld [vmem:[%s4064_s5 + $0x8] sm:$0xff]  ;;  %v4143_v53 = vlaneseq }
 0x2e8   :  { %v1986_v43 = vrot.slane %v3314_v60, %v2755_v32  ;;  %v1965_v5 = vrot.slane %v3314_v60, %v2695_v14  ;;  %v1979_v29 = vrot.slane %v3314_v60, %v2704_v17  ;;  %v1993_v38 = vrot.slane %v3314_v60, %v2708_v18 }
 0x2e9   :  { %v917_v16 = vmul.f32 %v789_v27, %v789_v27  ;;  %v823_v20 = vmul.f32 %v711_v40, %v711_v40  ;;  %v1406_v17 = vsub.f32 %v3016_v33, %v2855_v24 }
 0x2ea   :  { %v771_v62 = vpop.permute.xlu1 %770  ;;  %v775_v0 = vpop.permute.xlu0 %774 }
 0x2eb   :  { %v790_v58 = vsub.f32 %v771_v62, %v595_v7  ;;  %962 = vrot.lane.b32.xlu1 %v917_v16, %s2594_s1  ;;  %868 = vrot.lane.b32.xlu0 %v822_v34, %s2593_s0  ;;  %v791_v51 = vsub.f32 %v775_v0, %v3285_v39  ;;  %v1972_v7 = vrot.slane %v3314_v60, %v2686_v12  ;;  %v4144_v62 = vld [vmem:[#allocation20_spill] sm:$0xff] }
 0x2ec   :  { %v1410_v39 = vsub.f32 %v3023_v54, %v2866_v47  ;;  %v2000_v12 = vrot.slane %v3314_v60, %v2769_v35  ;;  %v1680_v47 = vadd.f32 %v3107_v42, %v1584_v57  ;;  %v1404_v35 = vsub.f32 %v3014_v28, %v2845_v10  ;;  %v4150_v57 = vld [vmem:[#allocation21_spill] sm:$0xff] }
 0x2ed   :  { %v918_v2 = vmul.f32 %v790_v58, %v790_v58  ;;  %v919_v19 = vmul.f32 %v791_v51, %v791_v51  ;;  %v1582_v18 = vmul.f32 %v1406_v17, %v1406_v17  ;;  %v1405_v10 = vsub.f32 %v3080_v56, %v2838_v3  ;;  %v4146_v58 = vld [vmem:[#allocation40_spill] sm:$0xff] }
 0x2ee   :  { %v256_v36 = vpop.permute.xlu1 %255  ;;  %v1586_v44 = vmul.f32 %v1410_v39, %v1410_v39  ;;  %v3341_v45 = vadd.f32 %v3113_v4, %v1680_v47  ;;  %v1407_v28 = vsub.f32 %v3082_v61, %v2903_v30  ;;  %v3374_v30 = vand.u32 127, %v4143_v53 }
 0x2ef   :  { %964 = vrot.lane.b32.xlu0 %v918_v2, %s2594_s1  ;;  %870 = vrot.lane.b32.xlu1 %v823_v20, %s2593_s0  ;;  %v260_v54 = vadd.f32 %v256_v36, %v3181_v13  ;;  %v1580_v13 = vmul.f32 %v1404_v35, %v1404_v35  ;;  %v1581_v4 = vmul.f32 %v1405_v10, %v1405_v10 }
 0x2f0   :  { %v1682_v32 = vadd.f32 %v3121_v26, %v1586_v44  ;;  %v2007_v26 = vrot.slane %v3314_v60, %v2718_v21  ;;  %v3362_v21 = vld [vmem:[%s4064_s5] sm:$0xff]  ;;  %v1583_v3 = vmul.f32 %v1407_v28, %v1407_v28  ;;  %vm1904_vm3 = vcmp.eq.s32.totalorder %v2675_v9, %v3374_v30  ;;  %s2596_s5 = smov [#allocation2]  }
 0x2f1   :  { %v1676_v24 = vadd.f32 %v3034_v6, %v1580_v13  ;;  %v2020_v33 = vcombine.high %v3362_v21, %v3362_v21  ;;  %v3378_v61 = vrot.slane %v3362_v21, %v2804_v46  ;;  %v1677_v34 = vadd.f32 %v3092_v37, %v1581_v4  ;;  %v4148_v37 = vld [vmem:[#allocation18_spill] sm:$0xff]  ;;  %v4152_v4 = vld [vmem:[#allocation23_spill] sm:$0xff]  ;;  %s2389_s3 = sshll.u32 %s2596_s5, 4  ;;  %s2390_s3 = int_to_ptr.vmem [resolvable:$true] %s2389_s3 }
 0x2f2   :  { %v264_v8 = vpop.permute.xlu1 %263  ;;  %v3346_v42 = vadd.f32 %v3125_v41, %v1682_v32  ;;  %v1678_v41 = vadd.f32 %v3036_v11, %v1582_v18  ;;  %v1409_v11 = vsub.f32 %v3086_v55, %v2913_v52  ;;  %v1411_v16 = vsub.f32 %v3088_v22, %v2927_v1  ;;  %v4147_v55 = vld [vmem:[#allocation9_spill] sm:$0xff]  ;;  %v4149_v22 = vld [vmem:[#allocation19_spill] sm:$0xff]  ;;  %s2545_s29 = scalar_lea.vmem %s2390_s3, 256  ;;  %p2550_p1 = scmp.lt.s32.totalorder %s2390_s3, %s2390_s3 }
 0x2f3   :  { %1974 = vbcast.lane.b32.xlu1 %v1972_v7, 256  ;;  %966 = vrot.lane.b32.xlu0 %v919_v19, %s2594_s1  ;;  %v3334_v15 = vadd.f32 %v264_v8, %v260_v54  ;;  %v3368_v56 = vadd.f32 %v3094_v31, %v1676_v24  ;;  %v3371_v6 = vrot.slane %v2020_v33, %v2804_v46  ;;  %v3408_v19 = vsel %vm1904_vm3, 0.0, %v2595_v63  ;;  %v4157_v63 = vld [vmem:[#allocation12_spill] sm:$0xff]  ;;  %p2546_p0 = scmp.ne.s32.totalorder %s2390_s3, %s2545_s29  ;;  %p2551_p2 = scmp.lt.s32.totalorder %s2545_s29, %s2545_s29 }
 0x2f4   :  { %v3381_v27 = vadd.f32 %v3099_v59, %v1678_v41  ;;  %v3390_v31 = vrot.slane %v3378_v61, %v2804_v46  ;;  %v1679_v0 = vadd.f32 %v4144_v62, %v1583_v3  ;;  %v4145_v59 = vld [vmem:[#allocation11_spill] sm:$0xff]  ;;  %v1412_v2 = vsub.f32 %v4148_v37, %v4147_v55  ;;  %v4153_v62 = vld [vmem:[#allocation41_spill] sm:$0xff] }
 0x2f5   :  { %2475 = vrsqrt.f32 %v3334_v15  ;;  %v1413_v20 = vsub.f32 %v4146_v58, %v4145_v59  ;;  %v3400_v52 = vrot.slane %v3371_v6, %v2804_v46  ;;  %v1585_v1 = vmul.f32 %v1409_v11, %v1409_v11  ;;  %v4154_v37 = vld [vmem:[#allocation13_spill] sm:$0xff]  ;;  %p2552_p3 = por %p2551_p2, %p2550_p1 }
 0x2f6   :  { %2477 = vrsqrt.f32 %v3341_v45  ;;  %v3406_v7 = vadd.f32 %v4149_v22, %v1677_v34  ;;  %v2121_v36 = vrot.slane %v3390_v31, %v2695_v14  ;;  %v3412_v39 = vmul.f32 %v1411_v16, %v1411_v16 }
 0x2f7   :  { %1988 = vbcast.lane.b32.xlu1 %v1986_v43, 256  ;;  %1967 = vbcast.lane.b32.xlu0 %v1965_v5, 256  ;;  %2479 = vrsqrt.f32 %v3252_v49  ;;  %v3416_v44 = vadd.f32 %v4150_v57, %v1679_v0  ;;  %v1588_v8 = vmul.f32 %v1412_v2, %v1412_v2  ;;  %vm1818_vm4 = vcmp.eq.f32.partialorder %v3341_v45, inf  ;;  %v4155_v2 = vld [vmem:[#allocation42_spill] sm:$0xff]  ;;  %p2553_p4 = pnand %p2552_p3, %p2546_p0 }
 0x2f8   :  { %2481 = vrsqrt.f32 %v3346_v42  ;;  %v2066_v54 = vcombine.high %v3400_v52, %v3400_v52  ;;  %vm1820_vm5 = vcmp.eq.f32.partialorder %v3341_v45, 0.0  ;;  %vm293_vm6 = vcmp.eq.f32.partialorder %v3334_v15, inf }
 0x2f9   :  { %2483 = vrsqrt.f32 %v3368_v56  ;;  %v1821_v17 = vand.u32 2147483648, %v3341_v45  ;;  %vm1832_vm7 = vcmp.eq.f32.partialorder %v3346_v42, inf  ;;  %v296_v10 = vand.u32 2147483648, %v3334_v15 }
 0x2fa   :  { %2485 = vrsqrt.f32 %v3381_v27  ;;  %v3440_v24 = vrot.slane %v2066_v54, %v2695_v14  ;;  %v1835_v28 = vand.u32 2147483648, %v3346_v42  ;;  %vm295_vm9 = vcmp.eq.f32.partialorder %v3334_v15, 0.0 }
 0x2fb   :  { %2002 = vbcast.lane.b32.xlu1 %v2000_v12, 256  ;;  %1981 = vbcast.lane.b32.xlu0 %v1979_v29, 256  ;;  %v3418_v12 = vmul.f32 %v1413_v20, %v1413_v20  ;;  %v2137_v29 = vrot.slane %v3400_v52, %v2695_v14  ;;  %2487 = vrsqrt.f32 %v3406_v7  ;;  %v270_v53 = vmul.f32 %v3314_v60, %v3334_v15 }
 0x2fc   :  { %2489 = vrsqrt.f32 %v3416_v44  ;;  %v289_v11 = vand.u32 2147483648, %v3252_v49  ;;  %v1684_v0 = vadd.f32 %v4153_v62, %v1588_v8  ;;  %vm1790_vm11 = vcmp.eq.f32.partialorder %v3368_v56, inf }
 0x2fd   :  { %vm1792_vm12 = vcmp.eq.f32.partialorder %v3368_v56, 0.0  ;;  %v1793_v58 = vand.u32 2147483648, %v3368_v56  ;;  %vm1804_vm13 = vcmp.eq.f32.partialorder %v3381_v27, inf  ;;  %vm1806_vm14 = vcmp.eq.f32.partialorder %v3381_v27, 0.0 }
 0x2fe   :  { %v273_v22 = vsel %vm271_vm1, %v270_v53, 0.0  ;;  %v1807_v57 = vand.u32 2147483648, %v3381_v27  ;;  %vm1797_vm15 = vcmp.eq.f32.partialorder %v3406_v7, inf  ;;  %v1800_v53 = vand.u32 2147483648, %v3406_v7 }
 0x2ff   :  { %1995 = vbcast.lane.b32.xlu0 %v1993_v38, 256  ;;  %v4151_v38 = vld [vmem:[#allocation22_spill] sm:$0xff]  ;;  %vm1811_vm0 = vcmp.eq.f32.partialorder %v3416_v44, inf  ;;  %vm1834_vm2 = vcmp.eq.f32.partialorder %v3346_v42, 0.0  ;;  %vm1799_vm3 = vcmp.eq.f32.partialorder %v3406_v7, 0.0 }
 0x300   :  { %v1681_v35 = vadd.f32 %v4151_v38, %v1585_v1  ;;  %v4156_v1 = vld [vmem:[#allocation57_spill] sm:$0xff] }
 0x302   :  { %v2476_v40 = vpop.eup %2475  ;;  %v3446_v3 = vadd.f32 %v4152_v4, %v1681_v35 }
 0x303   :  { %2009 = vbcast.lane.b32.xlu0 %v2007_v26, 256  ;;  %v2478_v9 = vpop.eup %2477  ;;  %v292_v43 = vmul.f32 %v2476_v40, %v3334_v15 }
 0x304   :  { %v2480_v51 = vpop.eup %2479  ;;  %v1817_v47 = vmul.f32 %v2478_v9, %v3341_v45  ;;  %2491 = vrsqrt.f32 %v3446_v3 }
 0x305   :  { %v2482_v5 = vpop.eup %2481  ;;  %v285_v32 = vmul.f32 %v2480_v51, %v3252_v49  ;;  %v294_v13 = vsel %vm293_vm6, %v3334_v15, %v292_v43  ;;  %v269_v15 = vmul.f32 %v3362_v21, %v3252_v49  ;;  %v1415_v51 = vsub.f32 %v4155_v2, %v4154_v37  ;;  %v4158_v43 = vld [vmem:[#allocation25_spill] sm:$0xff] }
 0x306   :  { %v1831_v26 = vmul.f32 %v2482_v5, %v3346_v42  ;;  %v1819_v18 = vsel %vm1818_vm4, %v3341_v45, %v1817_v47  ;;  %v297_v34 = vsel %vm295_vm9, %v296_v10, %v294_v13  ;;  %v2484_v45 = vpop.eup %2483  ;;  %v1414_v5 = vsub.f32 %v4158_v43, %v4157_v63  ;;  %v4159_v47 = vld [vmem:[#allocation43_spill] sm:$0xff] }
 0x307   :  { %v287_v41 = vsel %vm286_vm8, %v3252_v49, %v285_v32  ;;  %v3453_v16 = vsel %vm1820_vm5, %v1821_v17, %v1819_v18  ;;  %v299_v9 = vmul.f32 %v3314_v60, %v297_v34  ;;  %v2486_v55 = vpop.eup %2485  ;;  %v793_v49 = vmul.f32 %v4156_v1, %v4156_v1  ;;  %v4160_v17 = vld [vmem:[#allocation16_spill] sm:$0xff]  ;;  %v4164_v1 = vld [vmem:[#allocation27_spill] sm:$0xff] }
 0x308   :  { %v3458_v40 = vsel %vm1832_vm7, %v3346_v42, %v1831_v26  ;;  %v290_v59 = vsel %vm288_vm10, %v289_v11, %v287_v41  ;;  %v3480_v8 = vadd.f32 %v4159_v47, %v1684_v0  ;;  %v1789_v32 = vmul.f32 %v2484_v45, %v3368_v56  ;;  %v4161_v26 = vld [vmem:[#allocation32_spill] sm:$0xff]  ;;  %v4166_v47 = vld [vmem:[#allocation58_spill] sm:$0xff] }
 0x309   :  { %v298_v54 = vmul.f32 %v3362_v21, %v290_v59  ;;  %v272_v35 = vsel %vm271_vm1, %v269_v15, 0.0  ;;  %v1418_v13 = vsub.f32 %v4161_v26, %v4160_v17  ;;  %v1803_v18 = vmul.f32 %v2486_v55, %v3381_v27  ;;  %v4162_v21 = vld [vmem:[#allocation60_spill] sm:$0xff] }
 0x30a   :  { %v274_v41 = vadd.f32 %v273_v22, %v272_v35  ;;  %v301_v4 = vsel %vm271_vm1, %v299_v9, 0.0  ;;  %v1591_v11 = vmul.f32 %v1415_v51, %v1415_v51  ;;  %v794_v34 = vmul.f32 %v4162_v21, %v4162_v21  ;;  %v4163_v15 = vld [vmem:[#allocation24_spill] sm:$0xff]  ;;  %v4167_v35 = vld [vmem:[#allocation26_spill] sm:$0xff] }
 0x30b   :  { %v1590_v0 = vmul.f32 %v1414_v5, %v1414_v5  ;;  %v1683_v59 = vadd.f32 %v4163_v15, %v3412_v39  ;;  %2493 = vrsqrt.f32 %v3480_v8  ;;  %v300_v45 = vsel %vm271_vm1, %v298_v54, 0.0  ;;  %v4165_v5 = vld [vmem:[#allocation30_spill] sm:$0xff]  ;;  %v4168_v26 = vld [vmem:[#allocation44_spill] sm:$0xff] }
 0x30c   :  { %v1791_v9 = vsel %vm1790_vm11, %v3368_v56, %v1789_v32  ;;  %v302_v37 = vadd.f32 %v301_v4, %v300_v45  ;;  %v1594_v51 = vmul.f32 %v1418_v13, %v1418_v13  ;;  %v1685_v39 = vadd.f32 %v4164_v1, %v3418_v12  ;;  %v4170_v56 = vld [vmem:[#allocation36_spill] sm:$0xff] }
 0x30d   :  { %v843_v33 = vpop.permute.xlu0 %842  ;;  %v792_v54 = vmul.f32 %v4166_v47, %v4166_v47  ;;  %v3517_v12 = vadd.f32 %v4167_v35, %v1683_v59  ;;  %v3521_v17 = vsel %vm1792_vm12, %v1793_v58, %v1791_v9  ;;  %v1686_v13 = vadd.f32 %v4168_v26, %v1590_v0  ;;  %v4172_v59 = vld [vmem:[#allocation63_spill] sm:$0xff] }
 0x30e   :  { %v889_v38 = vadd.f32 %v843_v33, %v793_v49  ;;  %v2488_v33 = vpop.eup %2487  ;;  %v1805_v49 = vsel %vm1804_vm13, %v3381_v27, %v1803_v18  ;;  %v1828_v4 = vand.u32 2147483648, %v3446_v3  ;;  %v1690_v58 = vadd.f32 %v4170_v56, %v1594_v51 }
 0x30f   :  { %v2490_v2 = vpop.eup %2489  ;;  %v1796_v43 = vmul.f32 %v2488_v33, %v3406_v7  ;;  %v796_v45 = vmul.f32 %v4172_v59, %v4172_v59  ;;  %vm1813_vm4 = vcmp.eq.f32.partialorder %v3416_v44, 0.0  ;;  %vm1825_vm5 = vcmp.eq.f32.partialorder %v3446_v3, inf }
 0x310   :  { %v1810_v18 = vmul.f32 %v2490_v2, %v3416_v44  ;;  %v4174_v2 = vld [vmem:[#allocation28_spill] sm:$0xff] }
 0x311   :  { %v3541_v27 = vsel %vm1797_vm15, %v3406_v7, %v1796_v43  ;;  %v4178_v43 = vld [vmem:[#allocation45_spill] sm:$0xff]  ;;  %vm1827_vm15 = vcmp.eq.f32.partialorder %v3446_v3, 0.0 }
 0x315   :  { %v841_v22 = vpop.permute.xlu1 %840 }
 0x319   :  { %v845_v20 = vpop.permute.xlu0 %844 }
 0x31a   :  { %v890_v55 = vadd.f32 %v845_v20, %v794_v34  ;;  %v1687_v20 = vadd.f32 %v4165_v5, %v1591_v11  ;;  %v4169_v11 = vld [vmem:[#allocation29_spill] sm:$0xff]  ;;  %v2035_v34 = vcombine.high %v3378_v61, %v3378_v61  ;;  %v4175_v61 = vld [vmem:[#allocation31_spill] sm:$0xff] }
 0x31b   :  { %v3533_v21 = vadd.f32 %v4169_v11, %v1685_v39  ;;  %v2198_v1 = vmul.f32 %v2121_v36, %v4175_v61  ;;  %v4176_v39 = vld [vmem:[#allocation46_spill] sm:$0xff]  ;;  %v4179_v36 = vld [vmem:[#allocation37_spill] sm:$0xff] }
 0x31c   :  { %v2202_v47 = vmul.f32 %v2137_v29, %v4179_v36  ;;  %v3578_v26 = vrot.slane %v2035_v34, %v2804_v46  ;;  %v4181_v11 = vld [vmem:[#allocation62_spill] sm:$0xff] }
 0x31d   :  { %v939_v10 = vpop.permute.xlu0 %938  ;;  %v795_v56 = vmul.f32 %v4181_v11, %v4181_v11  ;;  %v3590_v29 = vmul.f32 %v2198_v1, %v3408_v19 }
 0x31e   :  { %v3493_v62 = vadd.f32 %v939_v10, %v889_v38  ;;  %v1814_v38 = vand.u32 2147483648, %v3416_v44  ;;  %v3528_v10 = vsel %vm1806_vm14, %v1807_v57, %v1805_v49  ;;  %v4171_v57 = vld [vmem:[#allocation33_spill] sm:$0xff]  ;;  %v3558_v49 = vadd.f32 %v4176_v39, %v1686_v13  ;;  %v4184_v39 = vld [vmem:[#allocation64_spill] sm:$0xff] }
 0x31f   :  { %275 = vadd.xlane.f32.xlu1 %v274_v41  ;;  %v888_v41 = vadd.f32 %v841_v22, %v792_v54  ;;  %v3544_v15 = vadd.f32 %v4171_v57, %v1687_v20  ;;  %v3563_v22 = vsel %vm1811_vm0, %v3416_v44, %v1810_v18  ;;  %v4180_v54 = vld [vmem:[#allocation38_spill] sm:$0xff]  ;;  %vm1846_vm14 = vcmp.eq.f32.partialorder %v3480_v8, inf }
 0x320   :  { %2495 = vrsqrt.f32 %v3493_v62  ;;  %v3575_v35 = vadd.f32 %v4180_v54, %v1690_v58  ;;  %v4182_v58 = vld [vmem:[#allocation39_spill] sm:$0xff]  ;;  %vm1009_vm6 = vcmp.eq.f32.partialorder %v3493_v62, inf  ;;  %vm1011_vm7 = vcmp.eq.f32.partialorder %v3493_v62, 0.0 }
 0x321   :  { %v941_v63 = vpop.permute.xlu0 %940  ;;  %v2204_v34 = vmul.f32 %v3440_v24, %v4182_v58  ;;  %v2125_v24 = vrot.slane %v3578_v26, %v2695_v14 }
 0x322   :  { %v3513_v32 = vadd.f32 %v941_v63, %v890_v55  ;;  %303 = vadd.xlane.f32.xlu0 %v302_v37  ;;  %v2492_v55 = vpop.eup %2491  ;;  %v4173_v37 = vld [vmem:[#allocation14_spill] sm:$0xff]  ;;  %v4177_v63 = vld [vmem:[#allocation15_spill] sm:$0xff] }
 0x323   :  { %v1416_v51 = vsub.f32 %v4174_v2, %v4173_v37  ;;  %v1417_v5 = vsub.f32 %v4178_v43, %v4177_v63  ;;  %v3602_v2 = vmul.f32 %v2202_v47, %v3408_v19  ;;  %v798_v63 = vmul.f32 %v4184_v39, %v4184_v39 }
 0x324   :  { %2497 = vrsqrt.f32 %v3513_v32  ;;  %v3622_v36 = vmul.f32 %v2204_v34, %v3408_v19  ;;  %v1849_v34 = vand.u32 2147483648, %v3480_v8  ;;  %vm1016_vm8 = vcmp.eq.f32.partialorder %v3513_v32, inf }
 0x325   :  { %v937_v33 = vpop.permute.xlu1 %936  ;;  %v849_v0 = vpop.permute.xlu0 %848  ;;  %2499 = vrsqrt.f32 %v3517_v12  ;;  %v1592_v52 = vmul.f32 %v1416_v51, %v1416_v51  ;;  %v3595_v57 = vmul.f32 %v1417_v5, %v1417_v5  ;;  %v2065_v51 = vcombine.high %v3390_v31, %v3390_v31  ;;  %v4185_v31 = vld [vmem:[#allocation48_spill] sm:$0xff] }
 0x326   :  { %v3548_v9 = vadd.f32 %v937_v33, %v888_v41  ;;  %v892_v20 = vadd.f32 %v849_v0, %v796_v45  ;;  %v3581_v41 = vmul.f32 %v2492_v55, %v3446_v3  ;;  %v2494_v0 = vpop.eup %2493  ;;  %v4183_v45 = vld [vmem:[#allocation8_spill] sm:$0xff]  ;;  %vm1018_vm9 = vcmp.eq.f32.partialorder %v3513_v32, 0.0 }
 0x327   :  { %v2014_v55 = vrot.slane %v3314_v60, %v4183_v45  ;;  %v1688_v47 = vadd.f32 %v4185_v31, %v1592_v52  ;;  %v3627_v54 = vmul.f32 %v2494_v0, %v3480_v8  ;;  %v4187_v0 = vld [vmem:[#allocation59_spill] sm:$0xff]  ;;  %v4189_v31 = vld [vmem:[#allocation49_spill] sm:$0xff] }
 0x328   :  { %2501 = vrsqrt.f32 %v3548_v9  ;;  %vm1002_vm10 = vcmp.eq.f32.partialorder %v3548_v9, inf  ;;  %vm1004_vm11 = vcmp.eq.f32.partialorder %v3548_v9, 0.0  ;;  %v3685_v44 = vsel %vm1825_vm5, %v3446_v3, %v3581_v41 }
 0x329   :  { %2503 = vrsqrt.f32 %v3533_v21  ;;  %v847_v13 = vpop.permute.xlu1 %846  ;;  %v945_v18 = vpop.permute.xlu0 %944 }
 0x32a   :  { %2505 = vrsqrt.f32 %v3544_v15  ;;  %v3586_v33 = vadd.f32 %v945_v18, %v892_v20  ;;  %v891_v59 = vadd.f32 %v847_v13, %v795_v56  ;;  %v3619_v20 = vsel %vm1834_vm2, %v1835_v28, %v3458_v40  ;;  %v4186_v28 = vld [vmem:[#allocation47_spill] sm:$0xff] }
 0x32b   :  { %2507 = vrsqrt.f32 %v3558_v49  ;;  %v1012_v18 = vand.u32 2147483648, %v3493_v62  ;;  %v2199_v40 = vmul.f32 %v2125_v24, %v4186_v28  ;;  %v2129_v56 = vrot.slane %v2065_v51, %v2695_v14 }
 0x32c   :  { %2509 = vrsqrt.f32 %v3586_v33  ;;  %v1019_v24 = vand.u32 2147483648, %v3513_v32  ;;  %vm1030_vm12 = vcmp.eq.f32.partialorder %v3586_v33, inf  ;;  %vm1032_vm13 = vcmp.eq.f32.partialorder %v3586_v33, 0.0 }
 0x32d   :  { %v2496_v37 = vpop.eup %2495  ;;  %2511 = vrsqrt.f32 %v3575_v35  ;;  %v943_v61 = vpop.permute.xlu1 %942  ;;  %vm1839_vm2 = vcmp.eq.f32.partialorder %v3517_v12, inf }
 0x32e   :  { %v853_v1 = vpop.permute.xlu0 %852  ;;  %v1008_v43 = vmul.f32 %v2496_v37, %v3493_v62  ;;  %v3612_v5 = vadd.f32 %v943_v61, %v891_v59  ;;  %v797_v59 = vmul.f32 %v4187_v0, %v4187_v0 }
 0x32f   :  { %v894_v11 = vadd.f32 %v853_v1, %v798_v63 }
 0x330   :  { %v1010_v13 = vsel %vm1009_vm6, %v3493_v62, %v1008_v43  ;;  %2513 = vrsqrt.f32 %v3612_v5  ;;  %2016 = vbcast.lane.b32.xlu1 %v2014_v55, 256  ;;  %v4188_v55 = vld [vmem:[#allocation35_spill] sm:$0xff]  ;;  %v1801_v62 = vsel %vm1799_vm3, %v1800_v53, %v3541_v27  ;;  %vm1023_vm0 = vcmp.eq.f32.partialorder %v3612_v5, inf }
 0x331   :  { %v2498_v42 = vpop.eup %2497  ;;  %v851_v52 = vpop.permute.xlu1 %850  ;;  %v1013_v45 = vsel %vm1011_vm7, %v1012_v18, %v1010_v13  ;;  %v3642_v1 = vadd.f32 %v4188_v55, %v1688_v47  ;;  %v2200_v47 = vmul.f32 %v2129_v56, %v4189_v31  ;;  %v2067_v13 = vcombine.high %v3578_v26, %v3578_v26  ;;  %v4190_v55 = vld [vmem:[#allocation61_spill] sm:$0xff] }
 0x332   :  { %v949_v58 = vpop.permute.xlu0 %948  ;;  %v1015_v37 = vmul.f32 %v2498_v42, %v3513_v32  ;;  %v2500_v51 = vpop.eup %2499  ;;  %v893_v63 = vadd.f32 %v851_v52, %v797_v59  ;;  %v2231_v7 = vsub.f32 %v1013_v45, %v1801_v62  ;;  %v799_v62 = vmul.f32 %v4190_v55, %v4190_v55 }
 0x333   :  { %v3639_v61 = vadd.f32 %v949_v58, %v894_v11  ;;  %v3660_v11 = vmul.f32 %v2199_v40, %v3408_v19  ;;  %v1005_v40 = vand.u32 2147483648, %v3548_v9  ;;  %v1033_v31 = vand.u32 2147483648, %v3586_v33 }
 0x334   :  { %v1017_v39 = vsel %vm1016_vm8, %v3513_v32, %v1015_v37  ;;  %v1815_v32 = vsel %vm1813_vm4, %v1814_v38, %v3563_v22  ;;  %v2133_v22 = vrot.slane %v2067_v13, %v2695_v14  ;;  %vm1025_vm3 = vcmp.eq.f32.partialorder %v3612_v5, 0.0 }
 0x335   :  { %2515 = vrsqrt.f32 %v3639_v61  ;;  %v2502_v43 = vpop.eup %2501  ;;  %v1020_v53 = vsel %vm1018_vm9, %v1019_v24, %v1017_v39  ;;  %v947_v27 = vpop.permute.xlu1 %946  ;;  %v2247_v0 = vmul.f32 %v2231_v7, %v3660_v11  ;;  %v4191_v39 = vld [vmem:[#allocation50_spill] sm:$0xff]  ;;  %vm1044_vm4 = vcmp.eq.f32.partialorder %v3639_v61, inf }
 0x336   :  { %v3657_v18 = vpop.eup %2503  ;;  %v1001_v42 = vmul.f32 %v2502_v43, %v3548_v9  ;;  %v3668_v28 = vadd.f32 %v947_v27, %v893_v63  ;;  %2517 = vrsqrt.f32 %v3642_v1  ;;  %v2232_v26 = vsub.f32 %v1020_v53, %v3528_v10 }
 0x337   :  { %v3670_v56 = vpop.eup %2505  ;;  %v3688_v10 = vmul.f32 %v2200_v47, %v3408_v19  ;;  %v1689_v63 = vadd.f32 %v4191_v39, %v3595_v57  ;;  %v1838_v57 = vmul.f32 %v2500_v51, %v3517_v12  ;;  %vm1046_vm5 = vcmp.eq.f32.partialorder %v3639_v61, 0.0 }
 0x338   :  { %v3676_v52 = vpop.eup %2507  ;;  %v1003_v58 = vsel %vm1002_vm10, %v3548_v9, %v1001_v42  ;;  %2519 = vrsqrt.f32 %v3668_v28  ;;  %v2036_v9 = vcombine.high %v3371_v6, %v3371_v6  ;;  %v2263_v42 = vmul.f32 %v2247_v0, %v2231_v7 }
 0x339   :  { %v2510_v38 = vpop.eup %2509  ;;  %v1006_v59 = vsel %vm1004_vm11, %v1005_v40, %v1003_v58  ;;  %v855_v45 = vpop.permute.xlu1 %854  ;;  %v2248_v43 = vmul.f32 %v2232_v26, %v3688_v10  ;;  %v1026_v7 = vand.u32 2147483648, %v3612_v5  ;;  %vm1841_vm6 = vcmp.eq.f32.partialorder %v3517_v12, 0.0 }
 0x33a   :  { %v3692_v37 = vpop.eup %2511  ;;  %v2230_v41 = vsub.f32 %v1006_v59, %v3521_v17  ;;  %v1029_v24 = vmul.f32 %v2510_v38, %v3586_v33  ;;  %v895_v13 = vadd.f32 %v855_v45, %v799_v62  ;;  %v4192_v17 = vld [vmem:[#allocation51_spill] sm:$0xff]  ;;  %v2064_v38 = vrot.slane %v2036_v9, %v2804_v46 }
 0x33b   :  { %v2201_v27 = vmul.f32 %v2133_v22, %v4192_v17  ;;  %v2279_v62 = vsel %vm271_vm1, %v2263_v42, 0.0  ;;  %vm1037_vm7 = vcmp.eq.f32.partialorder %v3668_v28, inf  ;;  %vm1039_vm8 = vcmp.eq.f32.partialorder %v3668_v28, 0.0 }
 0x33c   :  { %v2246_v47 = vmul.f32 %v2230_v41, %v3590_v29  ;;  %v1031_v6 = vsel %vm1030_vm12, %v3586_v33, %v1029_v24  ;;  %v2264_v33 = vmul.f32 %v2248_v43, %v2232_v26  ;;  %vm1848_vm9 = vcmp.eq.f32.partialorder %v3480_v8, 0.0 }
 0x33d   :  { %v2514_v53 = vpop.eup %2513  ;;  %v1034_v40 = vsel %vm1032_vm13, %v1033_v31, %v1031_v6  ;;  %v951_v58 = vpop.permute.xlu1 %950  ;;  %v3724_v45 = vmul.f32 %v2201_v27, %v3408_v19  ;;  %v2068_v27 = vcombine.high %v2064_v38, %v2064_v38  ;;  %vm1860_vm10 = vcmp.eq.f32.partialorder %v3558_v49, inf }
 0x33e   :  { %v2262_v59 = vmul.f32 %v2246_v47, %v2230_v41  ;;  %v1022_v55 = vmul.f32 %v2514_v53, %v3612_v5  ;;  %v3713_v39 = vadd.f32 %v951_v58, %v895_v13  ;;  %v2234_v51 = vsub.f32 %v1034_v40, %v3453_v16 }
 0x33f   :  { %v2141_v41 = vrot.slane %v2064_v38, %v2695_v14  ;;  %v2281_v31 = vsel %vm271_vm1, %v2264_v33, 0.0  ;;  %v1840_v58 = vsel %vm1839_vm2, %v3517_v12, %v1838_v57  ;;  %v1040_v38 = vand.u32 2147483648, %v3668_v28 }
 0x340   :  { %v1024_v22 = vsel %vm1023_vm0, %v3612_v5, %v1022_v55  ;;  %2521 = vrsqrt.f32 %v3713_v39  ;;  %v2278_v26 = vsel %vm271_vm1, %v2262_v59, 0.0  ;;  %v1047_v5 = vand.u32 2147483648, %v3639_v61  ;;  %v4193_v55 = vld [vmem:[#allocation52_spill] sm:$0xff] }
 0x341   :  { %v1027_v9 = vsel %vm1025_vm3, %v1026_v7, %v1024_v22  ;;  %v2280_v43 = vadd.f32 %v2279_v62, %v2278_v26  ;;  %v2250_v53 = vmul.f32 %v2234_v51, %v3602_v2  ;;  %v1842_v59 = vand.u32 2147483648, %v3517_v12  ;;  %v4194_v7 = vld [vmem:[#allocation54_spill] sm:$0xff] }
 0x342   :  { %v2516_v0 = vpop.eup %2515  ;;  %v2233_v24 = vsub.f32 %v1027_v9, %v1815_v32  ;;  %v3744_v33 = vadd.f32 %v4193_v55, %v1689_v63  ;;  %v2203_v22 = vmul.f32 %v2141_v41, %v4194_v7  ;;  %v3758_v63 = vsel %vm1846_vm14, %v3480_v8, %v3627_v54 }
 0x343   :  { %v1043_v16 = vmul.f32 %v2516_v0, %v3639_v61  ;;  %v3734_v47 = vpop.eup %2517  ;;  %v2282_v32 = vadd.f32 %v2281_v31, %v2280_v43  ;;  %v2266_v26 = vmul.f32 %v2250_v53, %v2234_v51  ;;  %v2149_v62 = vrot.slane %v2068_v27, %v2695_v14 }
 0x344   :  { %v2249_v6 = vmul.f32 %v2233_v24, %v3724_v45  ;;  %v1843_v54 = vsel %vm1841_vm6, %v1842_v59, %v1840_v58  ;;  %2523 = vrsqrt.f32 %v3744_v33  ;;  %v3773_v31 = vmul.f32 %v2203_v22, %v3408_v19 }
 0x345   :  { %v1045_v13 = vsel %vm1044_vm4, %v3639_v61, %v1043_v16  ;;  %v2520_v17 = vpop.eup %2519  ;;  %v857_v42 = vpop.permute.xlu0 %856  ;;  %v1859_v12 = vmul.f32 %v3676_v52, %v3558_v49  ;;  %v802_v58 = vmul.f32 %v3273_v50, %v3273_v50  ;;  %vm1051_vm11 = vcmp.eq.f32.partialorder %v3713_v39, inf }
 0x346   :  { %v1048_v40 = vsel %vm1046_vm5, %v1047_v5, %v1045_v13  ;;  %v1036_v61 = vmul.f32 %v2520_v17, %v3668_v28  ;;  %v2265_v9 = vmul.f32 %v2249_v6, %v2233_v24  ;;  %v859_v16 = vpop.permute.xlu1 %858  ;;  %v801_v24 = vmul.f32 %v3259_v25, %v3259_v25  ;;  %v4195_v13 = vld [vmem:[#allocation56_spill] sm:$0xff] }
 0x347   :  { %v2236_v0 = vsub.f32 %v1048_v40, %v3619_v20  ;;  %v1829_v20 = vsel %vm1827_vm15, %v1828_v4, %v3685_v44  ;;  %v800_v6 = vmul.f32 %v3261_v23, %v3261_v23  ;;  %v2285_v25 = vsel %vm271_vm1, %v2266_v26, 0.0 }
 0x348   :  { %v1038_v57 = vsel %vm1037_vm7, %v3668_v28, %v1036_v61  ;;  %v2283_v28 = vsel %vm271_vm1, %v2265_v9, 0.0  ;;  %v897_v4 = vadd.f32 %v859_v16, %v801_v24  ;;  %v2205_v53 = vmul.f32 %v2149_v62, %v4195_v13 }
 0x349   :  { %v1041_v41 = vsel %vm1039_vm8, %v1040_v38, %v1038_v57  ;;  %v953_v43 = vpop.permute.xlu0 %952  ;;  %v2284_v5 = vadd.f32 %v2283_v28, %v2282_v32  ;;  %v2252_v3 = vmul.f32 %v2236_v0, %v3622_v36  ;;  %v896_v32 = vadd.f32 %v857_v42, %v800_v6 }
 0x34a   :  { %v2235_v51 = vsub.f32 %v1041_v41, %v1829_v20  ;;  %v1054_v52 = vand.u32 2147483648, %v3713_v39  ;;  %vm1053_vm12 = vcmp.eq.f32.partialorder %v3713_v39, 0.0  ;;  %v3798_v50 = vmul.f32 %v2205_v53, %v3408_v19 }
 0x34b   :  { %v2286_v40 = vadd.f32 %v2285_v25, %v2284_v5  ;;  %v3792_v7 = vadd.f32 %v953_v43, %v896_v32  ;;  %v2268_v42 = vmul.f32 %v2252_v3, %v2236_v0  ;;  %v1863_v41 = vand.u32 2147483648, %v3558_v49  ;;  %v4196_v25 = vld [vmem:[#allocation66_spill] sm:$0xff] }
 0x34c   :  { %v2251_v23 = vmul.f32 %v2235_v51, %v3773_v31  ;;  %v803_v0 = vmul.f32 %v3271_v48, %v3271_v48  ;;  %v1861_v28 = vsel %vm1860_vm10, %v3558_v49, %v1859_v12  ;;  %vm1862_vm13 = vcmp.eq.f32.partialorder %v3558_v49, 0.0 }
 0x34d   :  { %v2522_v44 = vpop.eup %2521  ;;  %v955_v17 = vpop.permute.xlu1 %954  ;;  %v2289_v20 = vsel %vm271_vm1, %v2268_v42, 0.0  ;;  %v2069_v48 = vcombine.high %v3314_v60, %v3314_v60  ;;  %v1852_v3 = vmul.f32 %v3657_v18, %v3533_v21  ;;  %v804_v12 = vmul.f32 %v4196_v25, %v4196_v25 }
 0x34e   :  { %v861_v27 = vpop.permute.xlu0 %860  ;;  %v1050_v59 = vmul.f32 %v2522_v44, %v3713_v39  ;;  %v3789_v55 = vadd.f32 %v955_v17, %v897_v4  ;;  %v2267_v22 = vmul.f32 %v2251_v23, %v2235_v51  ;;  %v2076_v4 = vrot.slane %v3314_v60, %v2804_v46 }
 0x34f   :  { %v898_v38 = vadd.f32 %v861_v27, %v802_v58  ;;  %vm1853_vm14 = vcmp.eq.f32.partialorder %v3533_v21, inf  ;;  %v1856_v53 = vand.u32 2147483648, %v3533_v21  ;;  %v3831_v32 = vsel %vm1848_vm9, %v1849_v34, %v3758_v63 }
 0x350   :  { %v1052_v61 = vsel %vm1051_vm11, %v3713_v39, %v1050_v59  ;;  %2525 = vrsqrt.f32 %v3789_v55  ;;  %v2287_v62 = vsel %vm271_vm1, %v2267_v22, 0.0  ;;  %v3835_v60 = vsel %vm1862_vm13, %v1863_v41, %v1861_v28  ;;  %v4197_v59 = vld [vmem:[#allocation65_spill] sm:$0xff] }
 0x351   :  { %v863_v9 = vpop.permute.xlu1 %862  ;;  %v1055_v26 = vsel %vm1053_vm12, %v1054_v52, %v1052_v61  ;;  %v2288_v39 = vadd.f32 %v2287_v62, %v2286_v40  ;;  %2527 = vrsqrt.f32 %v3792_v7  ;;  %v1873_v18 = vmul.f32 %v3734_v47, %v3642_v1  ;;  %v2524_v17 = vpop.eup %2523 }
 0x352   :  { %v957_v57 = vpop.permute.xlu0 %956  ;;  %v2237_v43 = vsub.f32 %v1055_v26, %v1843_v54  ;;  %v899_v24 = vadd.f32 %v863_v9, %v803_v0  ;;  %v2083_v23 = vrot.slane %v2069_v48, %v2804_v46  ;;  %vm1874_vm15 = vcmp.eq.f32.partialorder %v3642_v1, inf }
 0x353   :  { %v3804_v16 = vadd.f32 %v957_v57, %v898_v38  ;;  %v2290_v5 = vadd.f32 %v2289_v20, %v2288_v39  ;;  %v1854_v8 = vsel %vm1853_vm14, %v3533_v21, %v1852_v3  ;;  %v2084_v34 = vcombine.high %v2076_v4, %v2076_v4  ;;  %v4198_v39 = vld [vmem:[#allocation68_spill] sm:$0xff] }
 0x354   :  { %v2253_v51 = vmul.f32 %v2237_v43, %v3798_v50  ;;  %v1866_v49 = vmul.f32 %v3670_v56, %v3544_v15  ;;  %v805_v47 = vmul.f32 %v4197_v59, %v4197_v59  ;;  %vm1867_vm0 = vcmp.eq.f32.partialorder %v3544_v15, inf }
 0x355   :  { %2529 = vrsqrt.f32 %v3804_v16  ;;  %v959_v54 = vpop.permute.xlu1 %958  ;;  %vm1855_vm2 = vcmp.eq.f32.partialorder %v3533_v21, 0.0  ;;  %v1880_v42 = vmul.f32 %v2524_v17, %v3744_v33  ;;  %v1875_v61 = vsel %vm1874_vm15, %v3642_v1, %v1873_v18 }
 0x356   :  { %v865_v6 = vpop.permute.xlu0 %864  ;;  %v3822_v44 = vadd.f32 %v959_v54, %v899_v24  ;;  %v2269_v13 = vmul.f32 %v2253_v51, %v2237_v43  ;;  %v1877_v38 = vand.u32 2147483648, %v3642_v1  ;;  %vm1881_vm3 = vcmp.eq.f32.partialorder %v3744_v33, inf }
 0x357   :  { %v900_v27 = vadd.f32 %v865_v6, %v804_v12  ;;  %v2085_v9 = vcombine.high %v2083_v23, %v2083_v23  ;;  %v2106_v41 = vrot.slane %v2084_v34, %v2804_v46  ;;  %v1868_v0 = vsel %vm1867_vm0, %v3544_v15, %v1866_v49 }
 0x358   :  { %2531 = vrsqrt.f32 %v3822_v44  ;;  %v2291_v63 = vsel %vm271_vm1, %v2269_v13, 0.0  ;;  %v1870_v43 = vand.u32 2147483648, %v3544_v15  ;;  %vm1876_vm4 = vcmp.eq.f32.partialorder %v3642_v1, 0.0 }
 0x359   :  { %v961_v40 = vpop.permute.xlu1 %960  ;;  %v3851_v22 = vadd.f32 %v2291_v63, %v2290_v5  ;;  %v806_v20 = vmul.f32 %v4198_v39, %v4198_v39  ;;  %vm1869_vm5 = vcmp.eq.f32.partialorder %v3544_v15, 0.0  ;;  %v1884_v24 = vand.u32 2147483648, %v3744_v33 }
 0x35a   :  { %v867_v58 = vpop.permute.xlu0 %866  ;;  %v3848_v52 = vadd.f32 %v961_v40, %v900_v27  ;;  %v2116_v51 = vcombine.high %v2106_v41, %v2106_v41  ;;  %v2092_v5 = vrot.slane %v2076_v4, %v2804_v46  ;;  %v1882_v48 = vsel %vm1881_vm3, %v3744_v33, %v1880_v42 }
 0x35b   :  { %v901_v56 = vadd.f32 %v867_v58, %v805_v47  ;;  %vm1883_vm6 = vcmp.eq.f32.partialorder %v3744_v33, 0.0  ;;  %v3875_v25 = vrot.slane %v2085_v9, %v2804_v46  ;;  %v1857_v13 = vsel %vm1855_vm2, %v1856_v53, %v1854_v8 }
 0x35c   :  { %2533 = vrsqrt.f32 %v3848_v52  ;;  %v3881_v4 = vsel %vm1869_vm5, %v1870_v43, %v1868_v0  ;;  %v2114_v18 = vcombine.high %v2092_v5, %v2092_v5  ;;  %v3885_v17 = vsel %vm1876_vm4, %v1877_v38, %v1875_v61 }
 0x35d   :  { %v2526_v57 = vpop.eup %2525  ;;  %v963_v26 = vpop.permute.xlu1 %962  ;;  %v2157_v58 = vrot.slane %v2106_v41, %v2695_v14  ;;  %v3892_v34 = vmul.f32 %v3692_v37, %v3575_v35  ;;  %v1891_v49 = vand.u32 2147483648, %v3575_v35  ;;  %vm1065_vm7 = vcmp.eq.f32.partialorder %v3789_v55, inf }
 0x35e   :  { %v869_v62 = vpop.permute.xlu0 %868  ;;  %v3865_v28 = vadd.f32 %v963_v26, %v901_v56  ;;  %v2528_v54 = vpop.eup %2527  ;;  %v1064_v3 = vmul.f32 %v2526_v57, %v3789_v55  ;;  %v3899_v1 = vsel %vm1883_vm6, %v1884_v24, %v1882_v48  ;;  %v3902_v53 = vrot.slane %v2083_v23, %v2804_v46 }
 0x35f   :  { %v902_v6 = vadd.f32 %v869_v62, %v806_v20  ;;  %v1057_v21 = vmul.f32 %v2528_v54, %v3792_v7  ;;  %v2165_v63 = vrot.slane %v2116_v51, %v2695_v14  ;;  %v2153_v37 = vrot.slane %v2092_v5, %v2695_v14 }
 0x360   :  { %2535 = vrsqrt.f32 %v3865_v28  ;;  %v1066_v8 = vsel %vm1065_vm7, %v3789_v55, %v1064_v3  ;;  %v2173_v59 = vrot.slane %v3875_v25, %v2695_v14  ;;  %v1068_v42 = vand.u32 2147483648, %v3789_v55 }
 0x361   :  { %v3877_v12 = vpop.permute.xlu1 %870  ;;  %v2161_v23 = vrot.slane %v2114_v18, %v2695_v14  ;;  %vm1067_vm8 = vcmp.eq.f32.partialorder %v3789_v55, 0.0  ;;  %vm1058_vm9 = vcmp.eq.f32.partialorder %v3792_v7, inf  ;;  %v2169_v26 = vrot.slane %v3902_v53, %v2695_v14 }
 0x362   :  { %v965_v15 = vpop.permute.xlu0 %964  ;;  %v2530_v27 = vpop.eup %2529  ;;  %v1069_v9 = vsel %vm1067_vm8, %v1068_v42, %v1066_v8  ;;  %v1059_v57 = vsel %vm1058_vm9, %v3792_v7, %v1057_v21  ;;  %vm1888_vm10 = vcmp.eq.f32.partialorder %v3575_v35, inf  ;;  %v2115_v62 = vcombine.high %v3902_v53, %v3902_v53 }
 0x363   :  { %v3887_v40 = vadd.f32 %v965_v15, %v902_v6  ;;  %v1071_v46 = vmul.f32 %v2530_v27, %v3804_v16  ;;  %vm1079_vm11 = vcmp.eq.f32.partialorder %v3822_v44, inf  ;;  %v1061_v55 = vand.u32 2147483648, %v3792_v7 }
 0x364   :  { %vm1072_vm12 = vcmp.eq.f32.partialorder %v3804_v16, inf  ;;  %vm1060_vm13 = vcmp.eq.f32.partialorder %v3792_v7, 0.0  ;;  %v1075_v51 = vand.u32 2147483648, %v3804_v16  ;;  %v2239_v5 = vsub.f32 %v1069_v9, %v1857_v13 }
 0x365   :  { %v2532_v47 = vpop.eup %2531  ;;  %2537 = vrsqrt.f32 %v3887_v40  ;;  %v1975_v33 = vpop.permute.xlu1 %1974  ;;  %v1073_v24 = vsel %vm1072_vm12, %v3804_v16, %v1071_v46  ;;  %v1082_v48 = vand.u32 2147483648, %v3822_v44  ;;  %v1062_v6 = vsel %vm1060_vm13, %v1061_v55, %v1059_v57 }
 0x366   :  { %v3911_v61 = vpop.permute.xlu0 %966  ;;  %v2207_v38 = vmul.f32 %v2157_v58, %v1975_v33  ;;  %v1078_v56 = vmul.f32 %v2532_v47, %v3822_v44  ;;  %vm1081_vm14 = vcmp.eq.f32.partialorder %v3822_v44, 0.0  ;;  %vm1074_vm15 = vcmp.eq.f32.partialorder %v3804_v16, 0.0 }
 0x367   :  { %vm1086_vm0 = vcmp.eq.f32.partialorder %v3848_v52, inf  ;;  %v1076_v18 = vsel %vm1074_vm15, %v1075_v51, %v1073_v24  ;;  %v2238_v21 = vsub.f32 %v1062_v6, %v3831_v32  ;;  %v1089_v16 = vand.u32 2147483648, %v3848_v52 }
 0x368   :  { %v3925_v41 = vmul.f32 %v2207_v38, %v3408_v19  ;;  %v1080_v43 = vsel %vm1079_vm11, %v3822_v44, %v1078_v56  ;;  %vm1093_vm2 = vcmp.eq.f32.partialorder %v3865_v28, inf  ;;  %vm1095_vm3 = vcmp.eq.f32.partialorder %v3865_v28, 0.0 }
 0x369   :  { %v2534_v0 = vpop.eup %2533  ;;  %v1989_v39 = vpop.permute.xlu1 %1988  ;;  %v1083_v7 = vsel %vm1081_vm14, %v1082_v48, %v1080_v43  ;;  %v2240_v32 = vsub.f32 %v1076_v18, %v3835_v60  ;;  %vm1088_vm4 = vcmp.eq.f32.partialorder %v3848_v52, 0.0  ;;  %vm1890_vm5 = vcmp.eq.f32.partialorder %v3575_v35, 0.0 }
 0x36a   :  { %v1968_v20 = vpop.permute.xlu0 %1967  ;;  %v2209_v54 = vmul.f32 %v2165_v63, %v1989_v39  ;;  %v2255_v15 = vmul.f32 %v2239_v5, %v3925_v41  ;;  %v1085_v27 = vmul.f32 %v2534_v0, %v3848_v52  ;;  %v2241_v47 = vsub.f32 %v1083_v7, %v3881_v4 }
 0x36b   :  { %v2206_v3 = vmul.f32 %v2153_v37, %v1968_v20  ;;  %v1096_v37 = vand.u32 2147483648, %v3865_v28  ;;  %v2177_v24 = vrot.slane %v2115_v62, %v2695_v14  ;;  %vm1100_vm6 = vcmp.eq.f32.partialorder %v3887_v40, inf }
 0x36c   :  { %v3941_v13 = vmul.f32 %v2209_v54, %v3408_v19  ;;  %v2271_v46 = vmul.f32 %v2255_v15, %v2239_v5  ;;  %v1087_v9 = vsel %vm1086_vm0, %v3848_v52, %v1085_v27  ;;  %v1103_v18 = vand.u32 2147483648, %v3887_v40 }
 0x36d   :  { %v2536_v58 = vpop.eup %2535  ;;  %v3945_v53 = vmul.f32 %v2206_v3, %v3408_v19  ;;  %v2003_v44 = vpop.permute.xlu1 %2002  ;;  %v1090_v20 = vsel %vm1088_vm4, %v1089_v16, %v1087_v9  ;;  %vm1102_vm7 = vcmp.eq.f32.partialorder %v3887_v40, 0.0  ;;  %v2321_v9 = vsel %vm271_vm1, %v3688_v10, 0.0 }
 0x36e   :  { %v1982_v8 = vpop.permute.xlu0 %1981  ;;  %v1092_v63 = vmul.f32 %v2536_v58, %v3865_v28  ;;  %v2211_v56 = vmul.f32 %v2173_v59, %v2003_v44  ;;  %v2257_v57 = vmul.f32 %v2241_v47, %v3941_v13  ;;  %v2295_v5 = vsel %vm271_vm1, %v2271_v46, 0.0 }
 0x36f   :  { %v2254_v42 = vmul.f32 %v2238_v21, %v3945_v53  ;;  %v2208_v33 = vmul.f32 %v2161_v23, %v1982_v8  ;;  %v2242_v62 = vsub.f32 %v1090_v20, %v3885_v17  ;;  %v2327_v10 = vsel %vm271_vm1, %v3773_v31, 0.0 }
 0x370   :  { %v1094_v38 = vsel %vm1093_vm2, %v3865_v28, %v1092_v63  ;;  %v1889_v28 = vsel %vm1888_vm10, %v3575_v35, %v3892_v34  ;;  %v2273_v34 = vmul.f32 %v2257_v57, %v2241_v47  ;;  %v2333_v31 = vsel %vm271_vm1, %v3945_v53, 0.0 }
 0x371   :  { %v2270_v55 = vmul.f32 %v2254_v42, %v2238_v21  ;;  %v1097_v0 = vsel %vm1095_vm3, %v1096_v37, %v1094_v38  ;;  %v3961_v43 = vmul.f32 %v2208_v33, %v3408_v19  ;;  %v1892_v17 = vsel %vm1890_vm5, %v1891_v49, %v1889_v28 }
 0x372   :  { %v1996_v4 = vpop.permute.xlu0 %1995  ;;  %v2538_v39 = vpop.eup %2537  ;;  %v2243_v60 = vsub.f32 %v1097_v0, %v3899_v1  ;;  %v3975_v1 = vmul.f32 %v2211_v56, %v3408_v19  ;;  %v2299_v44 = vsel %vm271_vm1, %v2273_v34, 0.0 }
 0x373   :  { %v2293_v59 = vsel %vm271_vm1, %v2270_v55, 0.0  ;;  %v2256_v23 = vmul.f32 %v2240_v32, %v3961_v43  ;;  %v2210_v52 = vmul.f32 %v2169_v26, %v1996_v4  ;;  %v1099_v54 = vmul.f32 %v2538_v39, %v3887_v40  ;;  %v4199_v4 = vld [vmem:[#allocation17_spill] sm:$0xff]  ;;  %v4200_v39 = vld [vmem:[#allocation34_spill] sm:$0xff] }
 0x374   :  { %v2294_v51 = vadd.f32 %v2293_v59, %v3851_v22  ;;  %v2259_v3 = vmul.f32 %v2243_v60, %v3975_v1  ;;  %v2325_v59 = vsel %vm271_vm1, %v3602_v2, 0.0 }
 0x375   :  { %v2272_v48 = vmul.f32 %v2256_v23, %v2240_v32  ;;  %v2226_v22 = vmul.f32 %v2210_v52, %v3408_v19  ;;  %v1101_v26 = vsel %vm1100_vm6, %v3887_v40, %v1099_v54  ;;  %v2318_v32 = vsel %vm271_vm1, %v3590_v29, 0.0  ;;  %v4202_v52 = vld [vmem:[#allocation53_spill] sm:$0xff] }
 0x376   :  { %v2010_v6 = vpop.permute.xlu0 %2009  ;;  %v2296_v15 = vadd.f32 %v2295_v5, %v2294_v51  ;;  %v1104_v8 = vsel %vm1102_vm7, %v1103_v18, %v1101_v26  ;;  %v2275_v63 = vmul.f32 %v2259_v3, %v2243_v60  ;;  %v2319_v40 = vsel %vm271_vm1, %v3660_v11, 0.0 }
 0x377   :  { %v2297_v7 = vsel %vm271_vm1, %v2272_v48, 0.0  ;;  %v2212_v27 = vmul.f32 %v2177_v24, %v2010_v6  ;;  %v2258_v21 = vmul.f32 %v2242_v62, %v2226_v22  ;;  %v2244_v42 = vsub.f32 %v1104_v8, %v1892_v17  ;;  %v4201_v24 = vld [vmem:[#allocation67_spill] sm:$0xff] }
 0x378   :  { %v2298_v58 = vadd.f32 %v2297_v7, %v2296_v15  ;;  %v2320_v35 = vadd.f32 %v2319_v40, %v2318_v32  ;;  %v2303_v49 = vsel %vm271_vm1, %v2275_v63, 0.0  ;;  %v2323_v11 = vsel %vm271_vm1, %v3724_v45, 0.0  ;;  %v4203_v6 = vld [vmem:[#allocation55_spill] sm:$0xff] }
 0x379   :  { %v3993_v16 = vmul.f32 %v2212_v27, %v3408_v19  ;;  %v2274_v47 = vmul.f32 %v2258_v21, %v2242_v62  ;;  %v1419_v60 = vsub.f32 %v4200_v39, %v4199_v4  ;;  %v807_v51 = vmul.f32 %v4201_v24, %v4201_v24  ;;  %v4204_v27 = vld [vmem:[#allocation10_spill] sm:$0xff] }
 0x37a   :  { %v2300_v37 = vadd.f32 %v2299_v44, %v2298_v58  ;;  %v2322_v29 = vadd.f32 %v2321_v9, %v2320_v35  ;;  %v2329_v45 = vsel %vm271_vm1, %v3622_v36, 0.0  ;;  %v2331_v15 = vsel %vm271_vm1, %v3798_v50, 0.0 }
 0x37b   :  { %v2301_v33 = vsel %vm271_vm1, %v2274_v47, 0.0  ;;  %v2260_v46 = vmul.f32 %v2244_v42, %v3993_v16  ;;  %v1595_v23 = vmul.f32 %v1419_v60, %v1419_v60  ;;  %v903_v48 = vadd.f32 %v3877_v12, %v807_v51 }
 0x37c   :  { %v2302_v38 = vadd.f32 %v2301_v33, %v2300_v37  ;;  %v2324_v28 = vadd.f32 %v2323_v11, %v2322_v29  ;;  %v2335_v36 = vsel %vm271_vm1, %v3925_v41, 0.0  ;;  %v2337_v12 = vsel %vm271_vm1, %v3961_v43, 0.0 }
 0x37d   :  { %v2276_v56 = vmul.f32 %v2260_v46, %v2244_v42  ;;  %v1691_v5 = vadd.f32 %v4202_v52, %v1595_v23  ;;  %v999_v54 = vadd.f32 %v3911_v61, %v903_v48  ;;  %v317_v58 = vrot.slane %v4204_v27, 4 }
 0x37e   :  { %v2304_v57 = vadd.f32 %v2303_v49, %v2302_v38  ;;  %v2326_v20 = vadd.f32 %v2325_v59, %v2324_v28  ;;  %v2339_v50 = vsel %vm271_vm1, %v3941_v13, 0.0  ;;  %v2341_v53 = vsel %vm271_vm1, %v2226_v22, 0.0 }
 0x37f   :  { %v2305_v55 = vsel %vm271_vm1, %v2276_v56, 0.0  ;;  %v1787_v2 = vadd.f32 %v4203_v6, %v1691_v5  ;;  %2539 = vrsqrt.f32 %v999_v54  ;;  %v2117_v8 = vcombine.high %v3875_v25, %v3875_v25 }
 0x380   :  { %v4005_v0 = vadd.f32 %v2305_v55, %v2304_v57  ;;  %v2328_v34 = vadd.f32 %v2327_v10, %v2326_v20  ;;  %v318_v41 = vadd.f32 %v317_v58, %v4204_v27  ;;  %vm1107_vm9 = vcmp.eq.f32.partialorder %v999_v54, inf }
 0x381   :  { %2541 = vrsqrt.f32 %v1787_v2  ;;  %vm1895_vm8 = vcmp.eq.f32.partialorder %v1787_v2, inf  ;;  %v2181_v42 = vrot.slane %v2117_v8, %v2695_v14  ;;  %v1898_v13 = vand.u32 2147483648, %v1787_v2 }
 0x382   :  { %v2330_v3 = vadd.f32 %v2329_v45, %v2328_v34  ;;  %v1110_v33 = vand.u32 2147483648, %v999_v54  ;;  %v319_v46 = vrot.slane %v318_v41, 2  ;;  %v2343_v22 = vsel %vm271_vm1, %v3975_v1, 0.0 }
 0x383   :  { %vm1897_vm10 = vcmp.eq.f32.partialorder %v1787_v2, 0.0  ;;  %vm1109_vm11 = vcmp.eq.f32.partialorder %v999_v54, 0.0  ;;  %v2345_v57 = vsel %vm271_vm1, %v3993_v16, 0.0 }
 0x384   :  { %v2332_v62 = vadd.f32 %v2331_v15, %v2330_v3  ;;  %v320_v1 = vadd.f32 %v319_v46, %v318_v41 }
 0x386   :  { %v2334_v7 = vadd.f32 %v2333_v31, %v2332_v62  ;;  %v321_v16 = vrot.slane %v320_v1, 1 }
 0x388   :  { %v2336_v26 = vadd.f32 %v2335_v36, %v2334_v7 }
 0x38a   :  { %v2338_v61 = vadd.f32 %v2337_v12, %v2336_v26 }
 0x38c   :  { %v2540_v18 = vpop.eup %2539  ;;  %v2340_v44 = vadd.f32 %v2339_v50, %v2338_v61 }
 0x38d   :  { %v1106_v17 = vmul.f32 %v2540_v18, %v999_v54 }
 0x38e   :  { %v2542_v21 = vpop.eup %2541  ;;  %v2342_v43 = vadd.f32 %v2341_v53, %v2340_v44 }
 0x38f   :  { %v1894_v63 = vmul.f32 %v2542_v21, %v1787_v2  ;;  %v1108_v32 = vsel %vm1107_vm9, %v999_v54, %v1106_v17  ;;  %v322_v54 = vadd.f32 %v321_v16, %v320_v1 }
 0x390   :  { %v2344_v35 = vadd.f32 %v2343_v22, %v2342_v43  ;;  %v1111_v9 = vsel %vm1109_vm11, %v1110_v33, %v1108_v32 }
 0x391   :  { %v1896_v40 = vsel %vm1895_vm8, %v1787_v2, %v1894_v63 }
 0x392   :  { %v1899_v11 = vsel %vm1897_vm10, %v1898_v13, %v1896_v40  ;;  %v2346_v28 = vadd.f32 %v2345_v57, %v2344_v35 }
 0x393   :  { %v2245_v39 = vsub.f32 %v1111_v9, %v1899_v11 }
 0x3a8   :  { %v276_v37 = vpop.xlane.xlu1 %275 }
 0x3a9   :  { %v277_v47 = vrot.slane %v276_v37, 4 }
 0x3ab   :  { %v278_v25 = vadd.f32 %v277_v47, %v276_v37  ;;  %v304_v38 = vpop.xlane.xlu0 %303 }
 0x3ac   :  { %v305_v49 = vrot.slane %v304_v38, 4  ;;  %v2017_v56 = vpop.permute.xlu1 %2016 }
 0x3ad   :  { %v279_v14 = vrot.slane %v278_v25, 2  ;;  %v2213_v55 = vmul.f32 %v2181_v42, %v2017_v56 }
 0x3ae   :  { %v306_v29 = vadd.f32 %v305_v49, %v304_v38 }
 0x3af   :  { %v2229_v4 = vmul.f32 %v2213_v55, %v3408_v19  ;;  %v280_v60 = vadd.f32 %v279_v14, %v278_v25 }
 0x3b0   :  { %v307_v59 = vrot.slane %v306_v29, 2 }
 0x3b1   :  { %v2261_v23 = vmul.f32 %v2245_v39, %v2229_v4  ;;  %v2347_v20 = vsel %vm271_vm1, %v2229_v4, 0.0  ;;  %v281_v10 = vrot.slane %v280_v60, 1 }
 0x3b2   :  { %v2348_v24 = vadd.f32 %v2347_v20, %v2346_v28  ;;  %v308_v51 = vadd.f32 %v307_v59, %v306_v29 }
 0x3b3   :  { %v2277_v52 = vmul.f32 %v2261_v23, %v2245_v39  ;;  %v282_v5 = vadd.f32 %v281_v10, %v280_v60 }
 0x3b4   :  { %2349 = vadd.xlane.f32.xlu1 %v2348_v24  ;;  %v309_v34 = vrot.slane %v308_v51, 1 }
 0x3b5   :  { %2446 = vpush %v282_v5  ;;  %v2307_v45 = vsel %vm271_vm1, %v2277_v52, 0.0 }
 0x3b6   :  { %v2308_v19 = vadd.f32 %v2307_v45, %v4005_v0  ;;  %v310_v48 = vadd.f32 %v309_v34, %v308_v51 }
 0x3b8   :  { %2309 = vadd.xlane.f32.xlu0 %v2308_v19  ;;  %2448 = vpush %v310_v48 }
 0x3b9   :  { %2450 = vpush %v322_v54 }
 0x3ba   :  { %2556 = shalt.err (!%p2553_p4)
}
 0x3bb   :  { %s2597_s30 = smov 128   ;;  %s2598_s12 = smov 8   ;;  %vm2362_vm1 = vcmp.eq.s32.totalorder %v3374_v30, 1  ;;  %vm2358_vm12 = vcmp.eq.s32.totalorder %v3374_v30, 0  ;;  %vm2366_vm13 = vcmp.eq.s32.totalorder %v3374_v30, 2  ;;  %vm2370_vm14 = vcmp.eq.s32.totalorder %v3374_v30, 3 }
 0x3bc   :  { %2395 = dma.vmem_to_hbm [thread:$0]  %s2390_s3, 256, %s4069_s10, [#allocation3], %s2597_s30, %s2597_s30, %s2598_s12   ;;  %vm2374_vm15 = vcmp.eq.s32.totalorder %v3374_v30, 4  ;;  %vm2378_vm0 = vcmp.eq.s32.totalorder %v3374_v30, 5  ;;  %vm2382_vm2 = vcmask 57344  }
 0x3bd   :  { %s2445_s4 = spop %2444  ;;  %s2599_s19 = smov [#allocation4]  }
 0x3be   :  { %v2359_v21 = vstv %s2445_s4  ;;  %s2402_s20 = sshll.u32 %s2599_s19, 4  ;;  %s2403_s20 = int_to_ptr.vmem [resolvable:$true] %s2402_s20 }
 0x3bf   :  { %v2360_v53 = vsel %vm2358_vm12, %v2359_v21, 0.0  ;;  %s2565_s21 = scalar_lea.vmem %s2403_s20, 16  ;;  %s2569_s0 = scalar_lea.vmem %s2403_s20, 32 }
 0x3c0   :  { %p2566_p5 = scmp.ne.s32.totalorder %s2403_s20, %s2565_s21  ;;  %p2570_p6 = scmp.lt.s32.totalorder %s2403_s20, %s2403_s20 }
 0x3c1   :  { %p2571_p7 = scmp.lt.s32.totalorder %s2569_s0, %s2565_s21 }
 0x3c3   :  { %p2572_p8 = por %p2571_p7, %p2570_p6 }
 0x3c5   :  { %p2573_p9 = pnand %p2572_p8, %p2566_p5 }
 0x3e6   :  { %s2447_s15 = spop %2446 }
 0x3e7   :  { %v2363_v58 = vstv %s2447_s15 }
 0x3e8   :  { %v2364_v50 = vsel %vm2362_vm1, %v2363_v58, 0.0 }
 0x3e9   :  { %s2449_s10 = spop %2448  ;;  %v2365_v8 = vadd.f32 %v2364_v50, %v2360_v53 }
 0x3ea   :  { %v2367_v44 = vstv %s2449_s10  ;;  %s2451_s16 = spop %2450 }
 0x3eb   :  { %v2368_v17 = vsel %vm2366_vm13, %v2367_v44, 0.0  ;;  %v2371_v63 = vstv %s2451_s16 }
 0x3ec   :  { %v2369_v41 = vadd.f32 %v2368_v17, %v2365_v8  ;;  %v2372_v43 = vsel %vm2370_vm14, %v2371_v63, 0.0 }
 0x3ee   :  { %v2373_v37 = vadd.f32 %v2372_v43, %v2369_v41 }
 0x43d   :  { %v2350_v0 = vpop.xlane.xlu1 %2349 }
 0x43e   :  { %v2351_v6 = vrot.slane %v2350_v0, 4 }
 0x440   :  { %v2352_v2 = vadd.f32 %v2351_v6, %v2350_v0 }
 0x441   :  { %v2310_v3 = vpop.xlane.xlu0 %2309 }
 0x442   :  { %v2353_v15 = vrot.slane %v2352_v2, 2  ;;  %v2311_v31 = vrot.slane %v2310_v3, 4 }
 0x444   :  { %v2312_v62 = vadd.f32 %v2311_v31, %v2310_v3  ;;  %v2354_v7 = vadd.f32 %v2353_v15, %v2352_v2 }
 0x446   :  { %v2313_v36 = vrot.slane %v2312_v62, 2  ;;  %v2355_v12 = vrot.slane %v2354_v7, 1 }
 0x448   :  { %v2314_v26 = vadd.f32 %v2313_v36, %v2312_v62  ;;  %v2356_v27 = vadd.f32 %v2355_v12, %v2354_v7 }
 0x44a   :  { %v2315_v61 = vrot.slane %v2314_v26, 1 }
 0x44c   :  { %v2316_v18 = vadd.f32 %v2315_v61, %v2314_v26 }
 0x44e   :  { %2452 = vpush %v2316_v18 }
 0x44f   :  { %2454 = vpush %v2356_v27 }
 0x47f   :  { %s2453_s17 = spop %2452 }
 0x480   :  { %v2375_v47 = vstv %s2453_s17  ;;  %s2455_s18 = spop %2454 }
 0x481   :  { %v2376_v42 = vsel %vm2374_vm15, %v2375_v47, 0.0  ;;  %v2379_v32 = vstv %s2455_s18 }
 0x482   :  { %v2377_v40 = vadd.f32 %v2376_v42, %v2373_v37  ;;  %v2380_v13 = vsel %vm2378_vm0, %v2379_v32, 0.0 }
 0x484   :  { %v2381_v33 = vadd.f32 %v2380_v13, %v2377_v40 }
 0x486   :  { %2383 = vst.msk [vmem:[#allocation4] sm:$0x1] %vm2382_vm2, %v2381_v33 }
 0x487   :  { %2576 = shalt.err (!%p2573_p9)
}
 0x488   :  { %2405 = dma.vmem_to_hbm [thread:$0]  %s2403_s20, 16, %s4070_s11, [#allocation5]  }
 0x489   :  { %2585 = dma.done.wait [#allocation3], 256  }
 0x48a   :  { %2586 = vsyncadd [#allocation3], 4294967040 }
 0x48b   :  { %2587 = dma.done.wait [#allocation5], 16  }
 0x48c   :  { %2588 = vsyncadd [#allocation5], 4294967280 }
 0x48d   :  { %2412 = vsyncpa [#allocation3], 1 }
 0x48e   :  { %2413 = vsyncpa [#allocation5], 1 }

</bundles_post_ra>
